<compile_context>
chip_gen: v7x
topology: tpu7x:2x2x1
jax: 0.10.0
libtpu: 0.0.40
codegen_flags: <defaults>
</compile_context>

<pallas_src>
import numpy as np
import jax
import jax.numpy as jnp
from jax.experimental import pallas as pl
from jax.experimental.pallas import tpu as pltpu

# ----- model hyper-parameters (small, deterministic) -----
B = 8              # batch
L = 16             # input signal length
C_OUT = 8          # conv out_channels
K = 3              # conv kernel_size
STRIDE = 1
PAD = 1
T = (L + 2 * PAD - K) // STRIDE + 1   # conv output timesteps = 16
HIDDEN = 32
NUM_CLASSES = 10
TH = 1.0                    # threshold_value
RESET_RESIDUAL = True       # True -> v_reset=None (soft/residual reset)

# bf16 MXU operands (spikes are {0,1}, test weights are multiples of 1/16 ->
# exactly representable; accumulation is f32).  Set to jnp.float32 for strict
# f32 parity with arbitrary-precision weights.
MXU_DTYPE = jnp.bfloat16


def _if_step(v, x):
    """One integrate-and-fire step: integrate, spike, reset. Returns (v_next, spike)."""
    v = v + x
    fired = v >= TH
    s = fired.astype(jnp.float32)
    if RESET_RESIDUAL:
        v = jnp.where(fired, v - TH, v)   # soft (residual) reset
    else:
        v = jnp.where(fired, 0.0, v)      # hard reset to v_reset = 0.0
    return v, s


def snn_kernel(x_ref, wc_ref, wh_ref, wo_ref, out_ref):
    x = x_ref[...]            # (B, L)
    wc = wc_ref[...]          # (C_OUT, K)
    wh = wh_ref[...]          # (HIDDEN, C_OUT)   PyTorch (out, in) order
    wo = wo_ref[...]          # (NUM_CLASSES, HIDDEN)

    # Hoisted broadcasts (JAX does not CSE broadcast_in_dim inside loops).
    wcT = wc.T                                                     # (K, C_OUT)
    w_bc = [jnp.broadcast_to(wcT[k:k + 1, :], (B, C_OUT)) for k in range(K)]
    x_bc = [jnp.broadcast_to(x[:, j:j + 1], (B, C_OUT)) for j in range(L)]

    # ---- layer 1: Conv1d taps + IF scan over all T timesteps (pure VPU, unrolled) ----
    # conv_t[b, c] = sum_k wc[c, k] * x_pad[b, t*STRIDE + k]   (zero padding resolved
    # at trace time by skipping out-of-range taps).
    v1 = jnp.zeros((B, C_OUT), jnp.float32)
    s1_blocks = []
    for t in range(T):
        conv_t = jnp.zeros((B, C_OUT), jnp.float32)
        for k in range(K):
            src = t * STRIDE + k - PAD
            if 0 <= src < L:
                conv_t = conv_t + x_bc[src] * w_bc[k]
        v1, s1 = _if_step(v1, conv_t)
        s1_blocks.append(s1)                                       # (B, C_OUT)
    # (T*B, C_OUT) = (128, 8): row index t*B + b. 8-row blocks are sublane-tile
    # aligned, so the concatenate is pure vreg stacking (no data movement).
    s1_all = jnp.concatenate(s1_blocks, axis=0)

    # ---- hidden Linear over ALL timesteps in a single MXU matmul ----
    h_all = jnp.dot(s1_all.astype(MXU_DTYPE), wh.T.astype(MXU_DTYPE),
                    preferred_element_type=jnp.float32)            # (T*B, HIDDEN)

    # ---- layer 2 IF scan (tile-aligned row slices, unrolled) ----
    v2 = jnp.zeros((B, HIDDEN), jnp.float32)
    s2_blocks = []
    for t in range(T):
        v2, s2 = _if_step(v2, h_all[t * B:(t + 1) * B, :])
        s2_blocks.append(s2)
    s2_all = jnp.concatenate(s2_blocks, axis=0)                    # (T*B, HIDDEN)

    # ---- output Linear in a single MXU matmul ----
    z_all = jnp.dot(s2_all.astype(MXU_DTYPE), wo.T.astype(MXU_DTYPE),
                    preferred_element_type=jnp.float32)            # (T*B, NUM_CLASSES)

    # ---- layer 3 IF scan + spike-count accumulation ----
    v3 = jnp.zeros((B, NUM_CLASSES), jnp.float32)
    acc = jnp.zeros((B, NUM_CLASSES), jnp.float32)
    for t in range(T):
        v3, s3 = _if_step(v3, z_all[t * B:(t + 1) * B, :])
        acc = acc + s3

    out_ref[...] = acc * (1.0 / T)        # (B, NUM_CLASSES), PyTorch orientation


def snn_mlp_forward(x, wc, wh, wo):
    """x: (B, L) float32 -> (B, NUM_CLASSES) float32. No wrapper-side pad/transpose."""
    return pl.pallas_call(
        snn_kernel,
        grid=(1,),
        in_specs=[
            pl.BlockSpec((B, L), lambda i: (0, 0)),
            pl.BlockSpec((C_OUT, K), lambda i: (0, 0)),
            pl.BlockSpec((HIDDEN, C_OUT), lambda i: (0, 0)),
            pl.BlockSpec((NUM_CLASSES, HIDDEN), lambda i: (0, 0)),
        ],
        out_specs=pl.BlockSpec((B, NUM_CLASSES), lambda i: (0, 0)),
        out_shape=jax.ShapeDtypeStruct((B, NUM_CLASSES), jnp.float32),
        compiler_params=pltpu.CompilerParams(dimension_semantics=("arbitrary",)),
    )(x, wc, wh, wo)


def snn_mlp_reference(x, wc, wh, wo):
    """Pure-JAX reference mirroring the PyTorch forward semantics (timestep-major)."""
    xp = jnp.pad(x.astype(jnp.float32), ((0, 0), (PAD, PAD)))       # (B, Lp)
    Bn = x.shape[0]
    conv = jnp.zeros((Bn, C_OUT, T), jnp.float32)
    for k in range(K):
        xs = xp[:, k: k + (T - 1) * STRIDE + 1: STRIDE]             # (B, T)
        conv = conv + xs[:, None, :] * wc[:, k][None, :, None]

    def reset(v, s):
        return v - s * TH if RESET_RESIDUAL else v * (1.0 - s)

    v1 = jnp.zeros((Bn, C_OUT)); v2 = jnp.zeros((Bn, HIDDEN))
    v3 = jnp.zeros((Bn, NUM_CLASSES)); acc = jnp.zeros((Bn, NUM_CLASSES))
    for t in range(T):
        v1 = v1 + conv[:, :, t]
        s1 = (v1 >= TH).astype(jnp.float32); v1 = reset(v1, s1)
        v2 = v2 + s1 @ wh.T
        s2 = (v2 >= TH).astype(jnp.float32); v2 = reset(v2, s2)
        v3 = v3 + s2 @ wo.T
        s3 = (v3 >= TH).astype(jnp.float32); v3 = reset(v3, s3)
        acc = acc + s3
    return acc / T


if __name__ == "__main__":
    key = jax.random.PRNGKey(0)
    k1, k2, k3, k4 = jax.random.split(key, 4)
    # Deterministic params/inputs on a coarse grid (multiples of 1/16) so the
    # spike thresholding is numerically unambiguous across backends (and exact
    # in bf16 for the MXU operands).
    x = jax.random.randint(k1, (B, L), -8, 8).astype(jnp.float32) / 16.0
    wc = jax.random.randint(k2, (C_OUT, K), -8, 8).astype(jnp.float32) / 16.0
    wh = jax.random.randint(k3, (HIDDEN, C_OUT), -8, 8).astype(jnp.float32) / 16.0
    wo = jax.random.randint(k4, (NUM_CLASSES, HIDDEN), -8, 8).astype(jnp.float32) / 16.0

    out = jax.block_until_ready(snn_mlp_forward(x, wc, wh, wo))
    ref = snn_mlp_reference(x, wc, wh, wo)

    assert out.shape == (B, NUM_CLASSES)
    assert np.allclose(np.asarray(out), np.asarray(ref), atol=1e-5), (
        f"max diff {np.max(np.abs(np.asarray(out) - np.asarray(ref)))}")
    print("KERNEL_OK")
</pallas_src>

<mosaic_0001>
module attributes {stable_mosaic.version = 11 : i64} {
  func.func @snn_kernel(%arg0: i32, %arg1: memref<8x16xf32, #tpu.memory_space<vmem>>, %arg2: memref<8x3xf32, #tpu.memory_space<vmem>>, %arg3: memref<32x8xf32, #tpu.memory_space<vmem>>, %arg4: memref<10x32xf32, #tpu.memory_space<vmem>>, %arg5: memref<8x10xf32, #tpu.memory_space<vmem>>) attributes {dimension_semantics = [#tpu.dimension_semantics<arbitrary>], iteration_bounds = array<i64: 1>, scalar_prefetch = 0 : i64, scratch_operands = 0 : i64, tpu.core_type = #tpu.core_type<tc>, window_params = [{pipeline_mode = #tpu.pipeline_mode<synchronous>, transform_indices = @transform_0, window_bounds = array<i64: 8, 16>}, {pipeline_mode = #tpu.pipeline_mode<synchronous>, transform_indices = @transform_1, window_bounds = array<i64: 8, 3>}, {pipeline_mode = #tpu.pipeline_mode<synchronous>, transform_indices = @transform_2, window_bounds = array<i64: 32, 8>}, {pipeline_mode = #tpu.pipeline_mode<synchronous>, transform_indices = @transform_3, window_bounds = array<i64: 10, 32>}, {pipeline_mode = #tpu.pipeline_mode<synchronous>, transform_indices = @transform_4, window_bounds = array<i64: 8, 10>}]} {
    %c0 = arith.constant 0 : index
    %c0_0 = arith.constant 0 : index
    %0 = vector.load %arg1[%c0, %c0_0] : memref<8x16xf32, #tpu.memory_space<vmem>>, vector<8x16xf32>
    %c0_1 = arith.constant 0 : index
    %c0_2 = arith.constant 0 : index
    %1 = vector.load %arg2[%c0_1, %c0_2] : memref<8x3xf32, #tpu.memory_space<vmem>>, vector<8x3xf32>
    %c0_3 = arith.constant 0 : index
    %c0_4 = arith.constant 0 : index
    %2 = vector.load %arg3[%c0_3, %c0_4] : memref<32x8xf32, #tpu.memory_space<vmem>>, vector<32x8xf32>
    %c0_5 = arith.constant 0 : index
    %c0_6 = arith.constant 0 : index
    %3 = vector.load %arg4[%c0_5, %c0_6] : memref<10x32xf32, #tpu.memory_space<vmem>>, vector<10x32xf32>
    %4 = tpu.transpose %1, [1, 0] : vector<8x3xf32> -> vector<3x8xf32>
    %5 = vector.extract_strided_slice %4 {offsets = [0, 0], sizes = [1, 8], strides = [1, 1]} : vector<3x8xf32> to vector<1x8xf32>
    %6 = vector.shape_cast %5 : vector<1x8xf32> to vector<1x8xf32>
    %7 = vector.broadcast %6 : vector<1x8xf32> to vector<8x8xf32>
    %8 = vector.extract_strided_slice %4 {offsets = [1, 0], sizes = [1, 8], strides = [1, 1]} : vector<3x8xf32> to vector<1x8xf32>
    %9 = vector.shape_cast %8 : vector<1x8xf32> to vector<1x8xf32>
    %10 = vector.broadcast %9 : vector<1x8xf32> to vector<8x8xf32>
    %11 = vector.extract_strided_slice %4 {offsets = [2, 0], sizes = [1, 8], strides = [1, 1]} : vector<3x8xf32> to vector<1x8xf32>
    %12 = vector.shape_cast %11 : vector<1x8xf32> to vector<1x8xf32>
    %13 = vector.broadcast %12 : vector<1x8xf32> to vector<8x8xf32>
    %14 = vector.extract_strided_slice %0 {offsets = [0, 0], sizes = [8, 1], strides = [1, 1]} : vector<8x16xf32> to vector<8x1xf32>
    %15 = vector.shape_cast %14 : vector<8x1xf32> to vector<8x1xf32>
    %16 = vector.broadcast %15 : vector<8x1xf32> to vector<8x8xf32>
    %17 = vector.extract_strided_slice %0 {offsets = [0, 1], sizes = [8, 1], strides = [1, 1]} : vector<8x16xf32> to vector<8x1xf32>
    %18 = vector.shape_cast %17 : vector<8x1xf32> to vector<8x1xf32>
    %19 = vector.broadcast %18 : vector<8x1xf32> to vector<8x8xf32>
    %20 = vector.extract_strided_slice %0 {offsets = [0, 2], sizes = [8, 1], strides = [1, 1]} : vector<8x16xf32> to vector<8x1xf32>
    %21 = vector.shape_cast %20 : vector<8x1xf32> to vector<8x1xf32>
    %22 = vector.broadcast %21 : vector<8x1xf32> to vector<8x8xf32>
    %23 = vector.extract_strided_slice %0 {offsets = [0, 3], sizes = [8, 1], strides = [1, 1]} : vector<8x16xf32> to vector<8x1xf32>
    %24 = vector.shape_cast %23 : vector<8x1xf32> to vector<8x1xf32>
    %25 = vector.broadcast %24 : vector<8x1xf32> to vector<8x8xf32>
    %26 = vector.extract_strided_slice %0 {offsets = [0, 4], sizes = [8, 1], strides = [1, 1]} : vector<8x16xf32> to vector<8x1xf32>
    %27 = vector.shape_cast %26 : vector<8x1xf32> to vector<8x1xf32>
    %28 = vector.broadcast %27 : vector<8x1xf32> to vector<8x8xf32>
    %29 = vector.extract_strided_slice %0 {offsets = [0, 5], sizes = [8, 1], strides = [1, 1]} : vector<8x16xf32> to vector<8x1xf32>
    %30 = vector.shape_cast %29 : vector<8x1xf32> to vector<8x1xf32>
    %31 = vector.broadcast %30 : vector<8x1xf32> to vector<8x8xf32>
    %32 = vector.extract_strided_slice %0 {offsets = [0, 6], sizes = [8, 1], strides = [1, 1]} : vector<8x16xf32> to vector<8x1xf32>
    %33 = vector.shape_cast %32 : vector<8x1xf32> to vector<8x1xf32>
    %34 = vector.broadcast %33 : vector<8x1xf32> to vector<8x8xf32>
    %35 = vector.extract_strided_slice %0 {offsets = [0, 7], sizes = [8, 1], strides = [1, 1]} : vector<8x16xf32> to vector<8x1xf32>
    %36 = vector.shape_cast %35 : vector<8x1xf32> to vector<8x1xf32>
    %37 = vector.broadcast %36 : vector<8x1xf32> to vector<8x8xf32>
    %38 = vector.extract_strided_slice %0 {offsets = [0, 8], sizes = [8, 1], strides = [1, 1]} : vector<8x16xf32> to vector<8x1xf32>
    %39 = vector.shape_cast %38 : vector<8x1xf32> to vector<8x1xf32>
    %40 = vector.broadcast %39 : vector<8x1xf32> to vector<8x8xf32>
    %41 = vector.extract_strided_slice %0 {offsets = [0, 9], sizes = [8, 1], strides = [1, 1]} : vector<8x16xf32> to vector<8x1xf32>
    %42 = vector.shape_cast %41 : vector<8x1xf32> to vector<8x1xf32>
    %43 = vector.broadcast %42 : vector<8x1xf32> to vector<8x8xf32>
    %44 = vector.extract_strided_slice %0 {offsets = [0, 10], sizes = [8, 1], strides = [1, 1]} : vector<8x16xf32> to vector<8x1xf32>
    %45 = vector.shape_cast %44 : vector<8x1xf32> to vector<8x1xf32>
    %46 = vector.broadcast %45 : vector<8x1xf32> to vector<8x8xf32>
    %47 = vector.extract_strided_slice %0 {offsets = [0, 11], sizes = [8, 1], strides = [1, 1]} : vector<8x16xf32> to vector<8x1xf32>
    %48 = vector.shape_cast %47 : vector<8x1xf32> to vector<8x1xf32>
    %49 = vector.broadcast %48 : vector<8x1xf32> to vector<8x8xf32>
    %50 = vector.extract_strided_slice %0 {offsets = [0, 12], sizes = [8, 1], strides = [1, 1]} : vector<8x16xf32> to vector<8x1xf32>
    %51 = vector.shape_cast %50 : vector<8x1xf32> to vector<8x1xf32>
    %52 = vector.broadcast %51 : vector<8x1xf32> to vector<8x8xf32>
    %53 = vector.extract_strided_slice %0 {offsets = [0, 13], sizes = [8, 1], strides = [1, 1]} : vector<8x16xf32> to vector<8x1xf32>
    %54 = vector.shape_cast %53 : vector<8x1xf32> to vector<8x1xf32>
    %55 = vector.broadcast %54 : vector<8x1xf32> to vector<8x8xf32>
    %56 = vector.extract_strided_slice %0 {offsets = [0, 14], sizes = [8, 1], strides = [1, 1]} : vector<8x16xf32> to vector<8x1xf32>
    %57 = vector.shape_cast %56 : vector<8x1xf32> to vector<8x1xf32>
    %58 = vector.broadcast %57 : vector<8x1xf32> to vector<8x8xf32>
    %59 = vector.extract_strided_slice %0 {offsets = [0, 15], sizes = [8, 1], strides = [1, 1]} : vector<8x16xf32> to vector<8x1xf32>
    %60 = vector.shape_cast %59 : vector<8x1xf32> to vector<8x1xf32>
    %61 = vector.broadcast %60 : vector<8x1xf32> to vector<8x8xf32>
    %cst = arith.constant 0.000000e+00 : f32
    %62 = vector.broadcast %cst : f32 to vector<8x8xf32>
    %cst_7 = arith.constant 0.000000e+00 : f32
    %63 = vector.broadcast %cst_7 : f32 to vector<8x8xf32>
    %64 = arith.mulf %16, %10 : vector<8x8xf32>
    %65 = arith.addf %63, %64 : vector<8x8xf32>
    %66 = arith.mulf %19, %13 : vector<8x8xf32>
    %67 = arith.addf %65, %66 : vector<8x8xf32>
    %68 = arith.addf %62, %67 : vector<8x8xf32>
    %cst_8 = arith.constant 1.000000e+00 : f32
    %69 = vector.broadcast %cst_8 : f32 to vector<8x8xf32>
    %70 = arith.cmpf oge, %68, %69 : vector<8x8xf32>
    %71 = arith.extui %70 : vector<8x8xi1> to vector<8x8xi32>
    %72 = arith.sitofp %71 : vector<8x8xi32> to vector<8x8xf32>
    %cst_9 = arith.constant 1.000000e+00 : f32
    %73 = vector.broadcast %cst_9 : f32 to vector<8x8xf32>
    %74 = arith.subf %68, %73 : vector<8x8xf32>
    %75 = arith.select %70, %74, %68 : vector<8x8xi1>, vector<8x8xf32>
    %cst_10 = arith.constant 0.000000e+00 : f32
    %76 = vector.broadcast %cst_10 : f32 to vector<8x8xf32>
    %77 = arith.mulf %16, %7 : vector<8x8xf32>
    %78 = arith.addf %76, %77 : vector<8x8xf32>
    %79 = arith.mulf %19, %10 : vector<8x8xf32>
    %80 = arith.addf %78, %79 : vector<8x8xf32>
    %81 = arith.mulf %22, %13 : vector<8x8xf32>
    %82 = arith.addf %80, %81 : vector<8x8xf32>
    %83 = arith.addf %75, %82 : vector<8x8xf32>
    %cst_11 = arith.constant 1.000000e+00 : f32
    %84 = vector.broadcast %cst_11 : f32 to vector<8x8xf32>
    %85 = arith.cmpf oge, %83, %84 : vector<8x8xf32>
    %86 = arith.extui %85 : vector<8x8xi1> to vector<8x8xi32>
    %87 = arith.sitofp %86 : vector<8x8xi32> to vector<8x8xf32>
    %cst_12 = arith.constant 1.000000e+00 : f32
    %88 = vector.broadcast %cst_12 : f32 to vector<8x8xf32>
    %89 = arith.subf %83, %88 : vector<8x8xf32>
    %90 = arith.select %85, %89, %83 : vector<8x8xi1>, vector<8x8xf32>
    %cst_13 = arith.constant 0.000000e+00 : f32
    %91 = vector.broadcast %cst_13 : f32 to vector<8x8xf32>
    %92 = arith.mulf %19, %7 : vector<8x8xf32>
    %93 = arith.addf %91, %92 : vector<8x8xf32>
    %94 = arith.mulf %22, %10 : vector<8x8xf32>
    %95 = arith.addf %93, %94 : vector<8x8xf32>
    %96 = arith.mulf %25, %13 : vector<8x8xf32>
    %97 = arith.addf %95, %96 : vector<8x8xf32>
    %98 = arith.addf %90, %97 : vector<8x8xf32>
    %cst_14 = arith.constant 1.000000e+00 : f32
    %99 = vector.broadcast %cst_14 : f32 to vector<8x8xf32>
    %100 = arith.cmpf oge, %98, %99 : vector<8x8xf32>
    %101 = arith.extui %100 : vector<8x8xi1> to vector<8x8xi32>
    %102 = arith.sitofp %101 : vector<8x8xi32> to vector<8x8xf32>
    %cst_15 = arith.constant 1.000000e+00 : f32
    %103 = vector.broadcast %cst_15 : f32 to vector<8x8xf32>
    %104 = arith.subf %98, %103 : vector<8x8xf32>
    %105 = arith.select %100, %104, %98 : vector<8x8xi1>, vector<8x8xf32>
    %cst_16 = arith.constant 0.000000e+00 : f32
    %106 = vector.broadcast %cst_16 : f32 to vector<8x8xf32>
    %107 = arith.mulf %22, %7 : vector<8x8xf32>
    %108 = arith.addf %106, %107 : vector<8x8xf32>
    %109 = arith.mulf %25, %10 : vector<8x8xf32>
    %110 = arith.addf %108, %109 : vector<8x8xf32>
    %111 = arith.mulf %28, %13 : vector<8x8xf32>
    %112 = arith.addf %110, %111 : vector<8x8xf32>
    %113 = arith.addf %105, %112 : vector<8x8xf32>
    %cst_17 = arith.constant 1.000000e+00 : f32
    %114 = vector.broadcast %cst_17 : f32 to vector<8x8xf32>
    %115 = arith.cmpf oge, %113, %114 : vector<8x8xf32>
    %116 = arith.extui %115 : vector<8x8xi1> to vector<8x8xi32>
    %117 = arith.sitofp %116 : vector<8x8xi32> to vector<8x8xf32>
    %cst_18 = arith.constant 1.000000e+00 : f32
    %118 = vector.broadcast %cst_18 : f32 to vector<8x8xf32>
    %119 = arith.subf %113, %118 : vector<8x8xf32>
    %120 = arith.select %115, %119, %113 : vector<8x8xi1>, vector<8x8xf32>
    %cst_19 = arith.constant 0.000000e+00 : f32
    %121 = vector.broadcast %cst_19 : f32 to vector<8x8xf32>
    %122 = arith.mulf %25, %7 : vector<8x8xf32>
    %123 = arith.addf %121, %122 : vector<8x8xf32>
    %124 = arith.mulf %28, %10 : vector<8x8xf32>
    %125 = arith.addf %123, %124 : vector<8x8xf32>
    %126 = arith.mulf %31, %13 : vector<8x8xf32>
    %127 = arith.addf %125, %126 : vector<8x8xf32>
    %128 = arith.addf %120, %127 : vector<8x8xf32>
    %cst_20 = arith.constant 1.000000e+00 : f32
    %129 = vector.broadcast %cst_20 : f32 to vector<8x8xf32>
    %130 = arith.cmpf oge, %128, %129 : vector<8x8xf32>
    %131 = arith.extui %130 : vector<8x8xi1> to vector<8x8xi32>
    %132 = arith.sitofp %131 : vector<8x8xi32> to vector<8x8xf32>
    %cst_21 = arith.constant 1.000000e+00 : f32
    %133 = vector.broadcast %cst_21 : f32 to vector<8x8xf32>
    %134 = arith.subf %128, %133 : vector<8x8xf32>
    %135 = arith.select %130, %134, %128 : vector<8x8xi1>, vector<8x8xf32>
    %cst_22 = arith.constant 0.000000e+00 : f32
    %136 = vector.broadcast %cst_22 : f32 to vector<8x8xf32>
    %137 = arith.mulf %28, %7 : vector<8x8xf32>
    %138 = arith.addf %136, %137 : vector<8x8xf32>
    %139 = arith.mulf %31, %10 : vector<8x8xf32>
    %140 = arith.addf %138, %139 : vector<8x8xf32>
    %141 = arith.mulf %34, %13 : vector<8x8xf32>
    %142 = arith.addf %140, %141 : vector<8x8xf32>
    %143 = arith.addf %135, %142 : vector<8x8xf32>
    %cst_23 = arith.constant 1.000000e+00 : f32
    %144 = vector.broadcast %cst_23 : f32 to vector<8x8xf32>
    %145 = arith.cmpf oge, %143, %144 : vector<8x8xf32>
    %146 = arith.extui %145 : vector<8x8xi1> to vector<8x8xi32>
    %147 = arith.sitofp %146 : vector<8x8xi32> to vector<8x8xf32>
    %cst_24 = arith.constant 1.000000e+00 : f32
    %148 = vector.broadcast %cst_24 : f32 to vector<8x8xf32>
    %149 = arith.subf %143, %148 : vector<8x8xf32>
    %150 = arith.select %145, %149, %143 : vector<8x8xi1>, vector<8x8xf32>
    %cst_25 = arith.constant 0.000000e+00 : f32
    %151 = vector.broadcast %cst_25 : f32 to vector<8x8xf32>
    %152 = arith.mulf %31, %7 : vector<8x8xf32>
    %153 = arith.addf %151, %152 : vector<8x8xf32>
    %154 = arith.mulf %34, %10 : vector<8x8xf32>
    %155 = arith.addf %153, %154 : vector<8x8xf32>
    %156 = arith.mulf %37, %13 : vector<8x8xf32>
    %157 = arith.addf %155, %156 : vector<8x8xf32>
    %158 = arith.addf %150, %157 : vector<8x8xf32>
    %cst_26 = arith.constant 1.000000e+00 : f32
    %159 = vector.broadcast %cst_26 : f32 to vector<8x8xf32>
    %160 = arith.cmpf oge, %158, %159 : vector<8x8xf32>
    %161 = arith.extui %160 : vector<8x8xi1> to vector<8x8xi32>
    %162 = arith.sitofp %161 : vector<8x8xi32> to vector<8x8xf32>
    %cst_27 = arith.constant 1.000000e+00 : f32
    %163 = vector.broadcast %cst_27 : f32 to vector<8x8xf32>
    %164 = arith.subf %158, %163 : vector<8x8xf32>
    %165 = arith.select %160, %164, %158 : vector<8x8xi1>, vector<8x8xf32>
    %cst_28 = arith.constant 0.000000e+00 : f32
    %166 = vector.broadcast %cst_28 : f32 to vector<8x8xf32>
    %167 = arith.mulf %34, %7 : vector<8x8xf32>
    %168 = arith.addf %166, %167 : vector<8x8xf32>
    %169 = arith.mulf %37, %10 : vector<8x8xf32>
    %170 = arith.addf %168, %169 : vector<8x8xf32>
    %171 = arith.mulf %40, %13 : vector<8x8xf32>
    %172 = arith.addf %170, %171 : vector<8x8xf32>
    %173 = arith.addf %165, %172 : vector<8x8xf32>
    %cst_29 = arith.constant 1.000000e+00 : f32
    %174 = vector.broadcast %cst_29 : f32 to vector<8x8xf32>
    %175 = arith.cmpf oge, %173, %174 : vector<8x8xf32>
    %176 = arith.extui %175 : vector<8x8xi1> to vector<8x8xi32>
    %177 = arith.sitofp %176 : vector<8x8xi32> to vector<8x8xf32>
    %cst_30 = arith.constant 1.000000e+00 : f32
    %178 = vector.broadcast %cst_30 : f32 to vector<8x8xf32>
    %179 = arith.subf %173, %178 : vector<8x8xf32>
    %180 = arith.select %175, %179, %173 : vector<8x8xi1>, vector<8x8xf32>
    %cst_31 = arith.constant 0.000000e+00 : f32
    %181 = vector.broadcast %cst_31 : f32 to vector<8x8xf32>
    %182 = arith.mulf %37, %7 : vector<8x8xf32>
    %183 = arith.addf %181, %182 : vector<8x8xf32>
    %184 = arith.mulf %40, %10 : vector<8x8xf32>
    %185 = arith.addf %183, %184 : vector<8x8xf32>
    %186 = arith.mulf %43, %13 : vector<8x8xf32>
    %187 = arith.addf %185, %186 : vector<8x8xf32>
    %188 = arith.addf %180, %187 : vector<8x8xf32>
    %cst_32 = arith.constant 1.000000e+00 : f32
    %189 = vector.broadcast %cst_32 : f32 to vector<8x8xf32>
    %190 = arith.cmpf oge, %188, %189 : vector<8x8xf32>
    %191 = arith.extui %190 : vector<8x8xi1> to vector<8x8xi32>
    %192 = arith.sitofp %191 : vector<8x8xi32> to vector<8x8xf32>
    %cst_33 = arith.constant 1.000000e+00 : f32
    %193 = vector.broadcast %cst_33 : f32 to vector<8x8xf32>
    %194 = arith.subf %188, %193 : vector<8x8xf32>
    %195 = arith.select %190, %194, %188 : vector<8x8xi1>, vector<8x8xf32>
    %cst_34 = arith.constant 0.000000e+00 : f32
    %196 = vector.broadcast %cst_34 : f32 to vector<8x8xf32>
    %197 = arith.mulf %40, %7 : vector<8x8xf32>
    %198 = arith.addf %196, %197 : vector<8x8xf32>
    %199 = arith.mulf %43, %10 : vector<8x8xf32>
    %200 = arith.addf %198, %199 : vector<8x8xf32>
    %201 = arith.mulf %46, %13 : vector<8x8xf32>
    %202 = arith.addf %200, %201 : vector<8x8xf32>
    %203 = arith.addf %195, %202 : vector<8x8xf32>
    %cst_35 = arith.constant 1.000000e+00 : f32
    %204 = vector.broadcast %cst_35 : f32 to vector<8x8xf32>
    %205 = arith.cmpf oge, %203, %204 : vector<8x8xf32>
    %206 = arith.extui %205 : vector<8x8xi1> to vector<8x8xi32>
    %207 = arith.sitofp %206 : vector<8x8xi32> to vector<8x8xf32>
    %cst_36 = arith.constant 1.000000e+00 : f32
    %208 = vector.broadcast %cst_36 : f32 to vector<8x8xf32>
    %209 = arith.subf %203, %208 : vector<8x8xf32>
    %210 = arith.select %205, %209, %203 : vector<8x8xi1>, vector<8x8xf32>
    %cst_37 = arith.constant 0.000000e+00 : f32
    %211 = vector.broadcast %cst_37 : f32 to vector<8x8xf32>
    %212 = arith.mulf %43, %7 : vector<8x8xf32>
    %213 = arith.addf %211, %212 : vector<8x8xf32>
    %214 = arith.mulf %46, %10 : vector<8x8xf32>
    %215 = arith.addf %213, %214 : vector<8x8xf32>
    %216 = arith.mulf %49, %13 : vector<8x8xf32>
    %217 = arith.addf %215, %216 : vector<8x8xf32>
    %218 = arith.addf %210, %217 : vector<8x8xf32>
    %cst_38 = arith.constant 1.000000e+00 : f32
    %219 = vector.broadcast %cst_38 : f32 to vector<8x8xf32>
    %220 = arith.cmpf oge, %218, %219 : vector<8x8xf32>
    %221 = arith.extui %220 : vector<8x8xi1> to vector<8x8xi32>
    %222 = arith.sitofp %221 : vector<8x8xi32> to vector<8x8xf32>
    %cst_39 = arith.constant 1.000000e+00 : f32
    %223 = vector.broadcast %cst_39 : f32 to vector<8x8xf32>
    %224 = arith.subf %218, %223 : vector<8x8xf32>
    %225 = arith.select %220, %224, %218 : vector<8x8xi1>, vector<8x8xf32>
    %cst_40 = arith.constant 0.000000e+00 : f32
    %226 = vector.broadcast %cst_40 : f32 to vector<8x8xf32>
    %227 = arith.mulf %46, %7 : vector<8x8xf32>
    %228 = arith.addf %226, %227 : vector<8x8xf32>
    %229 = arith.mulf %49, %10 : vector<8x8xf32>
    %230 = arith.addf %228, %229 : vector<8x8xf32>
    %231 = arith.mulf %52, %13 : vector<8x8xf32>
    %232 = arith.addf %230, %231 : vector<8x8xf32>
    %233 = arith.addf %225, %232 : vector<8x8xf32>
    %cst_41 = arith.constant 1.000000e+00 : f32
    %234 = vector.broadcast %cst_41 : f32 to vector<8x8xf32>
    %235 = arith.cmpf oge, %233, %234 : vector<8x8xf32>
    %236 = arith.extui %235 : vector<8x8xi1> to vector<8x8xi32>
    %237 = arith.sitofp %236 : vector<8x8xi32> to vector<8x8xf32>
    %cst_42 = arith.constant 1.000000e+00 : f32
    %238 = vector.broadcast %cst_42 : f32 to vector<8x8xf32>
    %239 = arith.subf %233, %238 : vector<8x8xf32>
    %240 = arith.select %235, %239, %233 : vector<8x8xi1>, vector<8x8xf32>
    %cst_43 = arith.constant 0.000000e+00 : f32
    %241 = vector.broadcast %cst_43 : f32 to vector<8x8xf32>
    %242 = arith.mulf %49, %7 : vector<8x8xf32>
    %243 = arith.addf %241, %242 : vector<8x8xf32>
    %244 = arith.mulf %52, %10 : vector<8x8xf32>
    %245 = arith.addf %243, %244 : vector<8x8xf32>
    %246 = arith.mulf %55, %13 : vector<8x8xf32>
    %247 = arith.addf %245, %246 : vector<8x8xf32>
    %248 = arith.addf %240, %247 : vector<8x8xf32>
    %cst_44 = arith.constant 1.000000e+00 : f32
    %249 = vector.broadcast %cst_44 : f32 to vector<8x8xf32>
    %250 = arith.cmpf oge, %248, %249 : vector<8x8xf32>
    %251 = arith.extui %250 : vector<8x8xi1> to vector<8x8xi32>
    %252 = arith.sitofp %251 : vector<8x8xi32> to vector<8x8xf32>
    %cst_45 = arith.constant 1.000000e+00 : f32
    %253 = vector.broadcast %cst_45 : f32 to vector<8x8xf32>
    %254 = arith.subf %248, %253 : vector<8x8xf32>
    %255 = arith.select %250, %254, %248 : vector<8x8xi1>, vector<8x8xf32>
    %cst_46 = arith.constant 0.000000e+00 : f32
    %256 = vector.broadcast %cst_46 : f32 to vector<8x8xf32>
    %257 = arith.mulf %52, %7 : vector<8x8xf32>
    %258 = arith.addf %256, %257 : vector<8x8xf32>
    %259 = arith.mulf %55, %10 : vector<8x8xf32>
    %260 = arith.addf %258, %259 : vector<8x8xf32>
    %261 = arith.mulf %58, %13 : vector<8x8xf32>
    %262 = arith.addf %260, %261 : vector<8x8xf32>
    %263 = arith.addf %255, %262 : vector<8x8xf32>
    %cst_47 = arith.constant 1.000000e+00 : f32
    %264 = vector.broadcast %cst_47 : f32 to vector<8x8xf32>
    %265 = arith.cmpf oge, %263, %264 : vector<8x8xf32>
    %266 = arith.extui %265 : vector<8x8xi1> to vector<8x8xi32>
    %267 = arith.sitofp %266 : vector<8x8xi32> to vector<8x8xf32>
    %cst_48 = arith.constant 1.000000e+00 : f32
    %268 = vector.broadcast %cst_48 : f32 to vector<8x8xf32>
    %269 = arith.subf %263, %268 : vector<8x8xf32>
    %270 = arith.select %265, %269, %263 : vector<8x8xi1>, vector<8x8xf32>
    %cst_49 = arith.constant 0.000000e+00 : f32
    %271 = vector.broadcast %cst_49 : f32 to vector<8x8xf32>
    %272 = arith.mulf %55, %7 : vector<8x8xf32>
    %273 = arith.addf %271, %272 : vector<8x8xf32>
    %274 = arith.mulf %58, %10 : vector<8x8xf32>
    %275 = arith.addf %273, %274 : vector<8x8xf32>
    %276 = arith.mulf %61, %13 : vector<8x8xf32>
    %277 = arith.addf %275, %276 : vector<8x8xf32>
    %278 = arith.addf %270, %277 : vector<8x8xf32>
    %cst_50 = arith.constant 1.000000e+00 : f32
    %279 = vector.broadcast %cst_50 : f32 to vector<8x8xf32>
    %280 = arith.cmpf oge, %278, %279 : vector<8x8xf32>
    %281 = arith.extui %280 : vector<8x8xi1> to vector<8x8xi32>
    %282 = arith.sitofp %281 : vector<8x8xi32> to vector<8x8xf32>
    %cst_51 = arith.constant 1.000000e+00 : f32
    %283 = vector.broadcast %cst_51 : f32 to vector<8x8xf32>
    %284 = arith.subf %278, %283 : vector<8x8xf32>
    %285 = arith.select %280, %284, %278 : vector<8x8xi1>, vector<8x8xf32>
    %cst_52 = arith.constant 0.000000e+00 : f32
    %286 = vector.broadcast %cst_52 : f32 to vector<8x8xf32>
    %287 = arith.mulf %58, %7 : vector<8x8xf32>
    %288 = arith.addf %286, %287 : vector<8x8xf32>
    %289 = arith.mulf %61, %10 : vector<8x8xf32>
    %290 = arith.addf %288, %289 : vector<8x8xf32>
    %291 = arith.addf %285, %290 : vector<8x8xf32>
    %cst_53 = arith.constant 1.000000e+00 : f32
    %292 = vector.broadcast %cst_53 : f32 to vector<8x8xf32>
    %293 = arith.cmpf oge, %291, %292 : vector<8x8xf32>
    %294 = arith.extui %293 : vector<8x8xi1> to vector<8x8xi32>
    %295 = arith.sitofp %294 : vector<8x8xi32> to vector<8x8xf32>
    %296 = tpu.concatenate %72, %87, %102, %117, %132, %147, %162, %177, %192, %207, %222, %237, %252, %267, %282, %295 in 0 : vector<8x8xf32>, vector<8x8xf32>, vector<8x8xf32>, vector<8x8xf32>, vector<8x8xf32>, vector<8x8xf32>, vector<8x8xf32>, vector<8x8xf32>, vector<8x8xf32>, vector<8x8xf32>, vector<8x8xf32>, vector<8x8xf32>, vector<8x8xf32>, vector<8x8xf32>, vector<8x8xf32>, vector<8x8xf32> -> vector<128x8xf32>
    %297 = arith.truncf %296 : vector<128x8xf32> to vector<128x8xbf16>
    %298 = tpu.transpose %2, [1, 0] : vector<32x8xf32> -> vector<8x32xf32>
    %299 = arith.truncf %298 : vector<8x32xf32> to vector<8x32xbf16>
    %cst_54 = arith.constant dense<0.000000e+00> : vector<128x32xf32>
    %300 = tpu.matmul %297, %299, %cst_54 {dimension_numbers = #tpu.dot_dimension_numbers<[1], [0], [0], [1], [0, 0, 1, 1], [], []>} : vector<128x8xbf16>, vector<8x32xbf16>, vector<128x32xf32> -> vector<128x32xf32>
    %cst_55 = arith.constant 0.000000e+00 : f32
    %301 = vector.broadcast %cst_55 : f32 to vector<8x32xf32>
    %302 = vector.extract_strided_slice %300 {offsets = [0, 0], sizes = [8, 32], strides = [1, 1]} : vector<128x32xf32> to vector<8x32xf32>
    %303 = arith.addf %301, %302 : vector<8x32xf32>
    %cst_56 = arith.constant 1.000000e+00 : f32
    %304 = vector.broadcast %cst_56 : f32 to vector<8x32xf32>
    %305 = arith.cmpf oge, %303, %304 : vector<8x32xf32>
    %306 = arith.extui %305 : vector<8x32xi1> to vector<8x32xi32>
    %307 = arith.sitofp %306 : vector<8x32xi32> to vector<8x32xf32>
    %cst_57 = arith.constant 1.000000e+00 : f32
    %308 = vector.broadcast %cst_57 : f32 to vector<8x32xf32>
    %309 = arith.subf %303, %308 : vector<8x32xf32>
    %310 = arith.select %305, %309, %303 : vector<8x32xi1>, vector<8x32xf32>
    %311 = vector.extract_strided_slice %300 {offsets = [8, 0], sizes = [8, 32], strides = [1, 1]} : vector<128x32xf32> to vector<8x32xf32>
    %312 = arith.addf %310, %311 : vector<8x32xf32>
    %cst_58 = arith.constant 1.000000e+00 : f32
    %313 = vector.broadcast %cst_58 : f32 to vector<8x32xf32>
    %314 = arith.cmpf oge, %312, %313 : vector<8x32xf32>
    %315 = arith.extui %314 : vector<8x32xi1> to vector<8x32xi32>
    %316 = arith.sitofp %315 : vector<8x32xi32> to vector<8x32xf32>
    %cst_59 = arith.constant 1.000000e+00 : f32
    %317 = vector.broadcast %cst_59 : f32 to vector<8x32xf32>
    %318 = arith.subf %312, %317 : vector<8x32xf32>
    %319 = arith.select %314, %318, %312 : vector<8x32xi1>, vector<8x32xf32>
    %320 = vector.extract_strided_slice %300 {offsets = [16, 0], sizes = [8, 32], strides = [1, 1]} : vector<128x32xf32> to vector<8x32xf32>
    %321 = arith.addf %319, %320 : vector<8x32xf32>
    %cst_60 = arith.constant 1.000000e+00 : f32
    %322 = vector.broadcast %cst_60 : f32 to vector<8x32xf32>
    %323 = arith.cmpf oge, %321, %322 : vector<8x32xf32>
    %324 = arith.extui %323 : vector<8x32xi1> to vector<8x32xi32>
    %325 = arith.sitofp %324 : vector<8x32xi32> to vector<8x32xf32>
    %cst_61 = arith.constant 1.000000e+00 : f32
    %326 = vector.broadcast %cst_61 : f32 to vector<8x32xf32>
    %327 = arith.subf %321, %326 : vector<8x32xf32>
    %328 = arith.select %323, %327, %321 : vector<8x32xi1>, vector<8x32xf32>
    %329 = vector.extract_strided_slice %300 {offsets = [24, 0], sizes = [8, 32], strides = [1, 1]} : vector<128x32xf32> to vector<8x32xf32>
    %330 = arith.addf %328, %329 : vector<8x32xf32>
    %cst_62 = arith.constant 1.000000e+00 : f32
    %331 = vector.broadcast %cst_62 : f32 to vector<8x32xf32>
    %332 = arith.cmpf oge, %330, %331 : vector<8x32xf32>
    %333 = arith.extui %332 : vector<8x32xi1> to vector<8x32xi32>
    %334 = arith.sitofp %333 : vector<8x32xi32> to vector<8x32xf32>
    %cst_63 = arith.constant 1.000000e+00 : f32
    %335 = vector.broadcast %cst_63 : f32 to vector<8x32xf32>
    %336 = arith.subf %330, %335 : vector<8x32xf32>
    %337 = arith.select %332, %336, %330 : vector<8x32xi1>, vector<8x32xf32>
    %338 = vector.extract_strided_slice %300 {offsets = [32, 0], sizes = [8, 32], strides = [1, 1]} : vector<128x32xf32> to vector<8x32xf32>
    %339 = arith.addf %337, %338 : vector<8x32xf32>
    %cst_64 = arith.constant 1.000000e+00 : f32
    %340 = vector.broadcast %cst_64 : f32 to vector<8x32xf32>
    %341 = arith.cmpf oge, %339, %340 : vector<8x32xf32>
    %342 = arith.extui %341 : vector<8x32xi1> to vector<8x32xi32>
    %343 = arith.sitofp %342 : vector<8x32xi32> to vector<8x32xf32>
    %cst_65 = arith.constant 1.000000e+00 : f32
    %344 = vector.broadcast %cst_65 : f32 to vector<8x32xf32>
    %345 = arith.subf %339, %344 : vector<8x32xf32>
    %346 = arith.select %341, %345, %339 : vector<8x32xi1>, vector<8x32xf32>
    %347 = vector.extract_strided_slice %300 {offsets = [40, 0], sizes = [8, 32], strides = [1, 1]} : vector<128x32xf32> to vector<8x32xf32>
    %348 = arith.addf %346, %347 : vector<8x32xf32>
    %cst_66 = arith.constant 1.000000e+00 : f32
    %349 = vector.broadcast %cst_66 : f32 to vector<8x32xf32>
    %350 = arith.cmpf oge, %348, %349 : vector<8x32xf32>
    %351 = arith.extui %350 : vector<8x32xi1> to vector<8x32xi32>
    %352 = arith.sitofp %351 : vector<8x32xi32> to vector<8x32xf32>
    %cst_67 = arith.constant 1.000000e+00 : f32
    %353 = vector.broadcast %cst_67 : f32 to vector<8x32xf32>
    %354 = arith.subf %348, %353 : vector<8x32xf32>
    %355 = arith.select %350, %354, %348 : vector<8x32xi1>, vector<8x32xf32>
    %356 = vector.extract_strided_slice %300 {offsets = [48, 0], sizes = [8, 32], strides = [1, 1]} : vector<128x32xf32> to vector<8x32xf32>
    %357 = arith.addf %355, %356 : vector<8x32xf32>
    %cst_68 = arith.constant 1.000000e+00 : f32
    %358 = vector.broadcast %cst_68 : f32 to vector<8x32xf32>
    %359 = arith.cmpf oge, %357, %358 : vector<8x32xf32>
    %360 = arith.extui %359 : vector<8x32xi1> to vector<8x32xi32>
    %361 = arith.sitofp %360 : vector<8x32xi32> to vector<8x32xf32>
    %cst_69 = arith.constant 1.000000e+00 : f32
    %362 = vector.broadcast %cst_69 : f32 to vector<8x32xf32>
    %363 = arith.subf %357, %362 : vector<8x32xf32>
    %364 = arith.select %359, %363, %357 : vector<8x32xi1>, vector<8x32xf32>
    %365 = vector.extract_strided_slice %300 {offsets = [56, 0], sizes = [8, 32], strides = [1, 1]} : vector<128x32xf32> to vector<8x32xf32>
    %366 = arith.addf %364, %365 : vector<8x32xf32>
    %cst_70 = arith.constant 1.000000e+00 : f32
    %367 = vector.broadcast %cst_70 : f32 to vector<8x32xf32>
    %368 = arith.cmpf oge, %366, %367 : vector<8x32xf32>
    %369 = arith.extui %368 : vector<8x32xi1> to vector<8x32xi32>
    %370 = arith.sitofp %369 : vector<8x32xi32> to vector<8x32xf32>
    %cst_71 = arith.constant 1.000000e+00 : f32
    %371 = vector.broadcast %cst_71 : f32 to vector<8x32xf32>
    %372 = arith.subf %366, %371 : vector<8x32xf32>
    %373 = arith.select %368, %372, %366 : vector<8x32xi1>, vector<8x32xf32>
    %374 = vector.extract_strided_slice %300 {offsets = [64, 0], sizes = [8, 32], strides = [1, 1]} : vector<128x32xf32> to vector<8x32xf32>
    %375 = arith.addf %373, %374 : vector<8x32xf32>
    %cst_72 = arith.constant 1.000000e+00 : f32
    %376 = vector.broadcast %cst_72 : f32 to vector<8x32xf32>
    %377 = arith.cmpf oge, %375, %376 : vector<8x32xf32>
    %378 = arith.extui %377 : vector<8x32xi1> to vector<8x32xi32>
    %379 = arith.sitofp %378 : vector<8x32xi32> to vector<8x32xf32>
    %cst_73 = arith.constant 1.000000e+00 : f32
    %380 = vector.broadcast %cst_73 : f32 to vector<8x32xf32>
    %381 = arith.subf %375, %380 : vector<8x32xf32>
    %382 = arith.select %377, %381, %375 : vector<8x32xi1>, vector<8x32xf32>
    %383 = vector.extract_strided_slice %300 {offsets = [72, 0], sizes = [8, 32], strides = [1, 1]} : vector<128x32xf32> to vector<8x32xf32>
    %384 = arith.addf %382, %383 : vector<8x32xf32>
    %cst_74 = arith.constant 1.000000e+00 : f32
    %385 = vector.broadcast %cst_74 : f32 to vector<8x32xf32>
    %386 = arith.cmpf oge, %384, %385 : vector<8x32xf32>
    %387 = arith.extui %386 : vector<8x32xi1> to vector<8x32xi32>
    %388 = arith.sitofp %387 : vector<8x32xi32> to vector<8x32xf32>
    %cst_75 = arith.constant 1.000000e+00 : f32
    %389 = vector.broadcast %cst_75 : f32 to vector<8x32xf32>
    %390 = arith.subf %384, %389 : vector<8x32xf32>
    %391 = arith.select %386, %390, %384 : vector<8x32xi1>, vector<8x32xf32>
    %392 = vector.extract_strided_slice %300 {offsets = [80, 0], sizes = [8, 32], strides = [1, 1]} : vector<128x32xf32> to vector<8x32xf32>
    %393 = arith.addf %391, %392 : vector<8x32xf32>
    %cst_76 = arith.constant 1.000000e+00 : f32
    %394 = vector.broadcast %cst_76 : f32 to vector<8x32xf32>
    %395 = arith.cmpf oge, %393, %394 : vector<8x32xf32>
    %396 = arith.extui %395 : vector<8x32xi1> to vector<8x32xi32>
    %397 = arith.sitofp %396 : vector<8x32xi32> to vector<8x32xf32>
    %cst_77 = arith.constant 1.000000e+00 : f32
    %398 = vector.broadcast %cst_77 : f32 to vector<8x32xf32>
    %399 = arith.subf %393, %398 : vector<8x32xf32>
    %400 = arith.select %395, %399, %393 : vector<8x32xi1>, vector<8x32xf32>
    %401 = vector.extract_strided_slice %300 {offsets = [88, 0], sizes = [8, 32], strides = [1, 1]} : vector<128x32xf32> to vector<8x32xf32>
    %402 = arith.addf %400, %401 : vector<8x32xf32>
    %cst_78 = arith.constant 1.000000e+00 : f32
    %403 = vector.broadcast %cst_78 : f32 to vector<8x32xf32>
    %404 = arith.cmpf oge, %402, %403 : vector<8x32xf32>
    %405 = arith.extui %404 : vector<8x32xi1> to vector<8x32xi32>
    %406 = arith.sitofp %405 : vector<8x32xi32> to vector<8x32xf32>
    %cst_79 = arith.constant 1.000000e+00 : f32
    %407 = vector.broadcast %cst_79 : f32 to vector<8x32xf32>
    %408 = arith.subf %402, %407 : vector<8x32xf32>
    %409 = arith.select %404, %408, %402 : vector<8x32xi1>, vector<8x32xf32>
    %410 = vector.extract_strided_slice %300 {offsets = [96, 0], sizes = [8, 32], strides = [1, 1]} : vector<128x32xf32> to vector<8x32xf32>
    %411 = arith.addf %409, %410 : vector<8x32xf32>
    %cst_80 = arith.constant 1.000000e+00 : f32
    %412 = vector.broadcast %cst_80 : f32 to vector<8x32xf32>
    %413 = arith.cmpf oge, %411, %412 : vector<8x32xf32>
    %414 = arith.extui %413 : vector<8x32xi1> to vector<8x32xi32>
    %415 = arith.sitofp %414 : vector<8x32xi32> to vector<8x32xf32>
    %cst_81 = arith.constant 1.000000e+00 : f32
    %416 = vector.broadcast %cst_81 : f32 to vector<8x32xf32>
    %417 = arith.subf %411, %416 : vector<8x32xf32>
    %418 = arith.select %413, %417, %411 : vector<8x32xi1>, vector<8x32xf32>
    %419 = vector.extract_strided_slice %300 {offsets = [104, 0], sizes = [8, 32], strides = [1, 1]} : vector<128x32xf32> to vector<8x32xf32>
    %420 = arith.addf %418, %419 : vector<8x32xf32>
    %cst_82 = arith.constant 1.000000e+00 : f32
    %421 = vector.broadcast %cst_82 : f32 to vector<8x32xf32>
    %422 = arith.cmpf oge, %420, %421 : vector<8x32xf32>
    %423 = arith.extui %422 : vector<8x32xi1> to vector<8x32xi32>
    %424 = arith.sitofp %423 : vector<8x32xi32> to vector<8x32xf32>
    %cst_83 = arith.constant 1.000000e+00 : f32
    %425 = vector.broadcast %cst_83 : f32 to vector<8x32xf32>
    %426 = arith.subf %420, %425 : vector<8x32xf32>
    %427 = arith.select %422, %426, %420 : vector<8x32xi1>, vector<8x32xf32>
    %428 = vector.extract_strided_slice %300 {offsets = [112, 0], sizes = [8, 32], strides = [1, 1]} : vector<128x32xf32> to vector<8x32xf32>
    %429 = arith.addf %427, %428 : vector<8x32xf32>
    %cst_84 = arith.constant 1.000000e+00 : f32
    %430 = vector.broadcast %cst_84 : f32 to vector<8x32xf32>
    %431 = arith.cmpf oge, %429, %430 : vector<8x32xf32>
    %432 = arith.extui %431 : vector<8x32xi1> to vector<8x32xi32>
    %433 = arith.sitofp %432 : vector<8x32xi32> to vector<8x32xf32>
    %cst_85 = arith.constant 1.000000e+00 : f32
    %434 = vector.broadcast %cst_85 : f32 to vector<8x32xf32>
    %435 = arith.subf %429, %434 : vector<8x32xf32>
    %436 = arith.select %431, %435, %429 : vector<8x32xi1>, vector<8x32xf32>
    %437 = vector.extract_strided_slice %300 {offsets = [120, 0], sizes = [8, 32], strides = [1, 1]} : vector<128x32xf32> to vector<8x32xf32>
    %438 = arith.addf %436, %437 : vector<8x32xf32>
    %cst_86 = arith.constant 1.000000e+00 : f32
    %439 = vector.broadcast %cst_86 : f32 to vector<8x32xf32>
    %440 = arith.cmpf oge, %438, %439 : vector<8x32xf32>
    %441 = arith.extui %440 : vector<8x32xi1> to vector<8x32xi32>
    %442 = arith.sitofp %441 : vector<8x32xi32> to vector<8x32xf32>
    %443 = tpu.concatenate %307, %316, %325, %334, %343, %352, %361, %370, %379, %388, %397, %406, %415, %424, %433, %442 in 0 : vector<8x32xf32>, vector<8x32xf32>, vector<8x32xf32>, vector<8x32xf32>, vector<8x32xf32>, vector<8x32xf32>, vector<8x32xf32>, vector<8x32xf32>, vector<8x32xf32>, vector<8x32xf32>, vector<8x32xf32>, vector<8x32xf32>, vector<8x32xf32>, vector<8x32xf32>, vector<8x32xf32>, vector<8x32xf32> -> vector<128x32xf32>
    %444 = arith.truncf %443 : vector<128x32xf32> to vector<128x32xbf16>
    %445 = tpu.transpose %3, [1, 0] : vector<10x32xf32> -> vector<32x10xf32>
    %446 = arith.truncf %445 : vector<32x10xf32> to vector<32x10xbf16>
    %cst_87 = arith.constant dense<0.000000e+00> : vector<128x10xf32>
    %447 = tpu.matmul %444, %446, %cst_87 {dimension_numbers = #tpu.dot_dimension_numbers<[1], [0], [0], [1], [0, 0, 1, 1], [], []>} : vector<128x32xbf16>, vector<32x10xbf16>, vector<128x10xf32> -> vector<128x10xf32>
    %cst_88 = arith.constant 0.000000e+00 : f32
    %448 = vector.broadcast %cst_88 : f32 to vector<8x10xf32>
    %cst_89 = arith.constant 0.000000e+00 : f32
    %449 = vector.broadcast %cst_89 : f32 to vector<8x10xf32>
    %450 = vector.extract_strided_slice %447 {offsets = [0, 0], sizes = [8, 10], strides = [1, 1]} : vector<128x10xf32> to vector<8x10xf32>
    %451 = arith.addf %448, %450 : vector<8x10xf32>
    %cst_90 = arith.constant 1.000000e+00 : f32
    %452 = vector.broadcast %cst_90 : f32 to vector<8x10xf32>
    %453 = arith.cmpf oge, %451, %452 : vector<8x10xf32>
    %454 = arith.extui %453 : vector<8x10xi1> to vector<8x10xi32>
    %455 = arith.sitofp %454 : vector<8x10xi32> to vector<8x10xf32>
    %cst_91 = arith.constant 1.000000e+00 : f32
    %456 = vector.broadcast %cst_91 : f32 to vector<8x10xf32>
    %457 = arith.subf %451, %456 : vector<8x10xf32>
    %458 = arith.select %453, %457, %451 : vector<8x10xi1>, vector<8x10xf32>
    %459 = arith.addf %449, %455 : vector<8x10xf32>
    %460 = vector.extract_strided_slice %447 {offsets = [8, 0], sizes = [8, 10], strides = [1, 1]} : vector<128x10xf32> to vector<8x10xf32>
    %461 = arith.addf %458, %460 : vector<8x10xf32>
    %cst_92 = arith.constant 1.000000e+00 : f32
    %462 = vector.broadcast %cst_92 : f32 to vector<8x10xf32>
    %463 = arith.cmpf oge, %461, %462 : vector<8x10xf32>
    %464 = arith.extui %463 : vector<8x10xi1> to vector<8x10xi32>
    %465 = arith.sitofp %464 : vector<8x10xi32> to vector<8x10xf32>
    %cst_93 = arith.constant 1.000000e+00 : f32
    %466 = vector.broadcast %cst_93 : f32 to vector<8x10xf32>
    %467 = arith.subf %461, %466 : vector<8x10xf32>
    %468 = arith.select %463, %467, %461 : vector<8x10xi1>, vector<8x10xf32>
    %469 = arith.addf %459, %465 : vector<8x10xf32>
    %470 = vector.extract_strided_slice %447 {offsets = [16, 0], sizes = [8, 10], strides = [1, 1]} : vector<128x10xf32> to vector<8x10xf32>
    %471 = arith.addf %468, %470 : vector<8x10xf32>
    %cst_94 = arith.constant 1.000000e+00 : f32
    %472 = vector.broadcast %cst_94 : f32 to vector<8x10xf32>
    %473 = arith.cmpf oge, %471, %472 : vector<8x10xf32>
    %474 = arith.extui %473 : vector<8x10xi1> to vector<8x10xi32>
    %475 = arith.sitofp %474 : vector<8x10xi32> to vector<8x10xf32>
    %cst_95 = arith.constant 1.000000e+00 : f32
    %476 = vector.broadcast %cst_95 : f32 to vector<8x10xf32>
    %477 = arith.subf %471, %476 : vector<8x10xf32>
    %478 = arith.select %473, %477, %471 : vector<8x10xi1>, vector<8x10xf32>
    %479 = arith.addf %469, %475 : vector<8x10xf32>
    %480 = vector.extract_strided_slice %447 {offsets = [24, 0], sizes = [8, 10], strides = [1, 1]} : vector<128x10xf32> to vector<8x10xf32>
    %481 = arith.addf %478, %480 : vector<8x10xf32>
    %cst_96 = arith.constant 1.000000e+00 : f32
    %482 = vector.broadcast %cst_96 : f32 to vector<8x10xf32>
    %483 = arith.cmpf oge, %481, %482 : vector<8x10xf32>
    %484 = arith.extui %483 : vector<8x10xi1> to vector<8x10xi32>
    %485 = arith.sitofp %484 : vector<8x10xi32> to vector<8x10xf32>
    %cst_97 = arith.constant 1.000000e+00 : f32
    %486 = vector.broadcast %cst_97 : f32 to vector<8x10xf32>
    %487 = arith.subf %481, %486 : vector<8x10xf32>
    %488 = arith.select %483, %487, %481 : vector<8x10xi1>, vector<8x10xf32>
    %489 = arith.addf %479, %485 : vector<8x10xf32>
    %490 = vector.extract_strided_slice %447 {offsets = [32, 0], sizes = [8, 10], strides = [1, 1]} : vector<128x10xf32> to vector<8x10xf32>
    %491 = arith.addf %488, %490 : vector<8x10xf32>
    %cst_98 = arith.constant 1.000000e+00 : f32
    %492 = vector.broadcast %cst_98 : f32 to vector<8x10xf32>
    %493 = arith.cmpf oge, %491, %492 : vector<8x10xf32>
    %494 = arith.extui %493 : vector<8x10xi1> to vector<8x10xi32>
    %495 = arith.sitofp %494 : vector<8x10xi32> to vector<8x10xf32>
    %cst_99 = arith.constant 1.000000e+00 : f32
    %496 = vector.broadcast %cst_99 : f32 to vector<8x10xf32>
    %497 = arith.subf %491, %496 : vector<8x10xf32>
    %498 = arith.select %493, %497, %491 : vector<8x10xi1>, vector<8x10xf32>
    %499 = arith.addf %489, %495 : vector<8x10xf32>
    %500 = vector.extract_strided_slice %447 {offsets = [40, 0], sizes = [8, 10], strides = [1, 1]} : vector<128x10xf32> to vector<8x10xf32>
    %501 = arith.addf %498, %500 : vector<8x10xf32>
    %cst_100 = arith.constant 1.000000e+00 : f32
    %502 = vector.broadcast %cst_100 : f32 to vector<8x10xf32>
    %503 = arith.cmpf oge, %501, %502 : vector<8x10xf32>
    %504 = arith.extui %503 : vector<8x10xi1> to vector<8x10xi32>
    %505 = arith.sitofp %504 : vector<8x10xi32> to vector<8x10xf32>
    %cst_101 = arith.constant 1.000000e+00 : f32
    %506 = vector.broadcast %cst_101 : f32 to vector<8x10xf32>
    %507 = arith.subf %501, %506 : vector<8x10xf32>
    %508 = arith.select %503, %507, %501 : vector<8x10xi1>, vector<8x10xf32>
    %509 = arith.addf %499, %505 : vector<8x10xf32>
    %510 = vector.extract_strided_slice %447 {offsets = [48, 0], sizes = [8, 10], strides = [1, 1]} : vector<128x10xf32> to vector<8x10xf32>
    %511 = arith.addf %508, %510 : vector<8x10xf32>
    %cst_102 = arith.constant 1.000000e+00 : f32
    %512 = vector.broadcast %cst_102 : f32 to vector<8x10xf32>
    %513 = arith.cmpf oge, %511, %512 : vector<8x10xf32>
    %514 = arith.extui %513 : vector<8x10xi1> to vector<8x10xi32>
    %515 = arith.sitofp %514 : vector<8x10xi32> to vector<8x10xf32>
    %cst_103 = arith.constant 1.000000e+00 : f32
    %516 = vector.broadcast %cst_103 : f32 to vector<8x10xf32>
    %517 = arith.subf %511, %516 : vector<8x10xf32>
    %518 = arith.select %513, %517, %511 : vector<8x10xi1>, vector<8x10xf32>
    %519 = arith.addf %509, %515 : vector<8x10xf32>
    %520 = vector.extract_strided_slice %447 {offsets = [56, 0], sizes = [8, 10], strides = [1, 1]} : vector<128x10xf32> to vector<8x10xf32>
    %521 = arith.addf %518, %520 : vector<8x10xf32>
    %cst_104 = arith.constant 1.000000e+00 : f32
    %522 = vector.broadcast %cst_104 : f32 to vector<8x10xf32>
    %523 = arith.cmpf oge, %521, %522 : vector<8x10xf32>
    %524 = arith.extui %523 : vector<8x10xi1> to vector<8x10xi32>
    %525 = arith.sitofp %524 : vector<8x10xi32> to vector<8x10xf32>
    %cst_105 = arith.constant 1.000000e+00 : f32
    %526 = vector.broadcast %cst_105 : f32 to vector<8x10xf32>
    %527 = arith.subf %521, %526 : vector<8x10xf32>
    %528 = arith.select %523, %527, %521 : vector<8x10xi1>, vector<8x10xf32>
    %529 = arith.addf %519, %525 : vector<8x10xf32>
    %530 = vector.extract_strided_slice %447 {offsets = [64, 0], sizes = [8, 10], strides = [1, 1]} : vector<128x10xf32> to vector<8x10xf32>
    %531 = arith.addf %528, %530 : vector<8x10xf32>
    %cst_106 = arith.constant 1.000000e+00 : f32
    %532 = vector.broadcast %cst_106 : f32 to vector<8x10xf32>
    %533 = arith.cmpf oge, %531, %532 : vector<8x10xf32>
    %534 = arith.extui %533 : vector<8x10xi1> to vector<8x10xi32>
    %535 = arith.sitofp %534 : vector<8x10xi32> to vector<8x10xf32>
    %cst_107 = arith.constant 1.000000e+00 : f32
    %536 = vector.broadcast %cst_107 : f32 to vector<8x10xf32>
    %537 = arith.subf %531, %536 : vector<8x10xf32>
    %538 = arith.select %533, %537, %531 : vector<8x10xi1>, vector<8x10xf32>
    %539 = arith.addf %529, %535 : vector<8x10xf32>
    %540 = vector.extract_strided_slice %447 {offsets = [72, 0], sizes = [8, 10], strides = [1, 1]} : vector<128x10xf32> to vector<8x10xf32>
    %541 = arith.addf %538, %540 : vector<8x10xf32>
    %cst_108 = arith.constant 1.000000e+00 : f32
    %542 = vector.broadcast %cst_108 : f32 to vector<8x10xf32>
    %543 = arith.cmpf oge, %541, %542 : vector<8x10xf32>
    %544 = arith.extui %543 : vector<8x10xi1> to vector<8x10xi32>
    %545 = arith.sitofp %544 : vector<8x10xi32> to vector<8x10xf32>
    %cst_109 = arith.constant 1.000000e+00 : f32
    %546 = vector.broadcast %cst_109 : f32 to vector<8x10xf32>
    %547 = arith.subf %541, %546 : vector<8x10xf32>
    %548 = arith.select %543, %547, %541 : vector<8x10xi1>, vector<8x10xf32>
    %549 = arith.addf %539, %545 : vector<8x10xf32>
    %550 = vector.extract_strided_slice %447 {offsets = [80, 0], sizes = [8, 10], strides = [1, 1]} : vector<128x10xf32> to vector<8x10xf32>
    %551 = arith.addf %548, %550 : vector<8x10xf32>
    %cst_110 = arith.constant 1.000000e+00 : f32
    %552 = vector.broadcast %cst_110 : f32 to vector<8x10xf32>
    %553 = arith.cmpf oge, %551, %552 : vector<8x10xf32>
    %554 = arith.extui %553 : vector<8x10xi1> to vector<8x10xi32>
    %555 = arith.sitofp %554 : vector<8x10xi32> to vector<8x10xf32>
    %cst_111 = arith.constant 1.000000e+00 : f32
    %556 = vector.broadcast %cst_111 : f32 to vector<8x10xf32>
    %557 = arith.subf %551, %556 : vector<8x10xf32>
    %558 = arith.select %553, %557, %551 : vector<8x10xi1>, vector<8x10xf32>
    %559 = arith.addf %549, %555 : vector<8x10xf32>
    %560 = vector.extract_strided_slice %447 {offsets = [88, 0], sizes = [8, 10], strides = [1, 1]} : vector<128x10xf32> to vector<8x10xf32>
    %561 = arith.addf %558, %560 : vector<8x10xf32>
    %cst_112 = arith.constant 1.000000e+00 : f32
    %562 = vector.broadcast %cst_112 : f32 to vector<8x10xf32>
    %563 = arith.cmpf oge, %561, %562 : vector<8x10xf32>
    %564 = arith.extui %563 : vector<8x10xi1> to vector<8x10xi32>
    %565 = arith.sitofp %564 : vector<8x10xi32> to vector<8x10xf32>
    %cst_113 = arith.constant 1.000000e+00 : f32
    %566 = vector.broadcast %cst_113 : f32 to vector<8x10xf32>
    %567 = arith.subf %561, %566 : vector<8x10xf32>
    %568 = arith.select %563, %567, %561 : vector<8x10xi1>, vector<8x10xf32>
    %569 = arith.addf %559, %565 : vector<8x10xf32>
    %570 = vector.extract_strided_slice %447 {offsets = [96, 0], sizes = [8, 10], strides = [1, 1]} : vector<128x10xf32> to vector<8x10xf32>
    %571 = arith.addf %568, %570 : vector<8x10xf32>
    %cst_114 = arith.constant 1.000000e+00 : f32
    %572 = vector.broadcast %cst_114 : f32 to vector<8x10xf32>
    %573 = arith.cmpf oge, %571, %572 : vector<8x10xf32>
    %574 = arith.extui %573 : vector<8x10xi1> to vector<8x10xi32>
    %575 = arith.sitofp %574 : vector<8x10xi32> to vector<8x10xf32>
    %cst_115 = arith.constant 1.000000e+00 : f32
    %576 = vector.broadcast %cst_115 : f32 to vector<8x10xf32>
    %577 = arith.subf %571, %576 : vector<8x10xf32>
    %578 = arith.select %573, %577, %571 : vector<8x10xi1>, vector<8x10xf32>
    %579 = arith.addf %569, %575 : vector<8x10xf32>
    %580 = vector.extract_strided_slice %447 {offsets = [104, 0], sizes = [8, 10], strides = [1, 1]} : vector<128x10xf32> to vector<8x10xf32>
    %581 = arith.addf %578, %580 : vector<8x10xf32>
    %cst_116 = arith.constant 1.000000e+00 : f32
    %582 = vector.broadcast %cst_116 : f32 to vector<8x10xf32>
    %583 = arith.cmpf oge, %581, %582 : vector<8x10xf32>
    %584 = arith.extui %583 : vector<8x10xi1> to vector<8x10xi32>
    %585 = arith.sitofp %584 : vector<8x10xi32> to vector<8x10xf32>
    %cst_117 = arith.constant 1.000000e+00 : f32
    %586 = vector.broadcast %cst_117 : f32 to vector<8x10xf32>
    %587 = arith.subf %581, %586 : vector<8x10xf32>
    %588 = arith.select %583, %587, %581 : vector<8x10xi1>, vector<8x10xf32>
    %589 = arith.addf %579, %585 : vector<8x10xf32>
    %590 = vector.extract_strided_slice %447 {offsets = [112, 0], sizes = [8, 10], strides = [1, 1]} : vector<128x10xf32> to vector<8x10xf32>
    %591 = arith.addf %588, %590 : vector<8x10xf32>
    %cst_118 = arith.constant 1.000000e+00 : f32
    %592 = vector.broadcast %cst_118 : f32 to vector<8x10xf32>
    %593 = arith.cmpf oge, %591, %592 : vector<8x10xf32>
    %594 = arith.extui %593 : vector<8x10xi1> to vector<8x10xi32>
    %595 = arith.sitofp %594 : vector<8x10xi32> to vector<8x10xf32>
    %cst_119 = arith.constant 1.000000e+00 : f32
    %596 = vector.broadcast %cst_119 : f32 to vector<8x10xf32>
    %597 = arith.subf %591, %596 : vector<8x10xf32>
    %598 = arith.select %593, %597, %591 : vector<8x10xi1>, vector<8x10xf32>
    %599 = arith.addf %589, %595 : vector<8x10xf32>
    %600 = vector.extract_strided_slice %447 {offsets = [120, 0], sizes = [8, 10], strides = [1, 1]} : vector<128x10xf32> to vector<8x10xf32>
    %601 = arith.addf %598, %600 : vector<8x10xf32>
    %cst_120 = arith.constant 1.000000e+00 : f32
    %602 = vector.broadcast %cst_120 : f32 to vector<8x10xf32>
    %603 = arith.cmpf oge, %601, %602 : vector<8x10xf32>
    %604 = arith.extui %603 : vector<8x10xi1> to vector<8x10xi32>
    %605 = arith.sitofp %604 : vector<8x10xi32> to vector<8x10xf32>
    %606 = arith.addf %599, %605 : vector<8x10xf32>
    %cst_121 = arith.constant 6.250000e-02 : f32
    %607 = vector.broadcast %cst_121 : f32 to vector<8x10xf32>
    %608 = arith.mulf %606, %607 : vector<8x10xf32>
    %c0_122 = arith.constant 0 : index
    %c0_123 = arith.constant 0 : index
    %609 = vector.load %arg5[%c0_122, %c0_123] : memref<8x10xf32, #tpu.memory_space<vmem>>, vector<8x10xf32>
    tpu.vector_store %arg5[%c0_122, %c0_123], %608 {strides = array<i32>} : memref<8x10xf32, #tpu.memory_space<vmem>>, vector<8x10xf32>,
    return
  }
  func.func @transform_0(%arg0: i32) -> (i32, i32) {
    %c0_i32 = arith.constant 0 : i32
    %c0_i32_0 = arith.constant 0 : i32
    %c0_i32_1 = arith.constant 0 : i32
    return %c0_i32, %c0_i32_0 : i32, i32
  }
  func.func @transform_1(%arg0: i32) -> (i32, i32) {
    %c0_i32 = arith.constant 0 : i32
    %c0_i32_0 = arith.constant 0 : i32
    %c0_i32_1 = arith.constant 0 : i32
    return %c0_i32, %c0_i32_0 : i32, i32
  }
  func.func @transform_2(%arg0: i32) -> (i32, i32) {
    %c0_i32 = arith.constant 0 : i32
    %c0_i32_0 = arith.constant 0 : i32
    %c0_i32_1 = arith.constant 0 : i32
    return %c0_i32, %c0_i32_0 : i32, i32
  }
  func.func @transform_3(%arg0: i32) -> (i32, i32) {
    %c0_i32 = arith.constant 0 : i32
    %c0_i32_0 = arith.constant 0 : i32
    %c0_i32_1 = arith.constant 0 : i32
    return %c0_i32, %c0_i32_0 : i32, i32
  }
  func.func @transform_4(%arg0: i32) -> (i32, i32) {
    %c0_i32 = arith.constant 0 : i32
    %c0_i32_0 = arith.constant 0 : i32
    %c0_i32_1 = arith.constant 0 : i32
    return %c0_i32, %c0_i32_0 : i32, i32
  }
}

</mosaic_0001>

<bundles_post_ra>
// kernel: tpu_custom_call.1
= control target key start
LH: loop header
LB: loop body
LE: loop exit
PB: predicated region body
PF: predicated region fallthrough
CT: control target
= control target key end

     0   :  { %v1099_v1 = vmov 2   ;;  %v1100_v2 = vmov 0   ;;  %s1336_s0 = inlined_call_operand.vmem [shape: f32[8,16], index: 0, kind: input, shape index: {}]   ;;  %s1337_s1 = inlined_call_operand.vmem [shape: f32[8,3], index: 1, kind: input, shape index: {}]   ;;  %s1338_s2 = inlined_call_operand.vmem [shape: f32[32,8], index: 2, kind: input, shape index: {}]   ;;  %s1339_s3 = inlined_call_operand.vmem [shape: f32[10,32], index: 3, kind: input, shape index: {}]   ;;  %s1340_s4 = inlined_call_operand.hbm [shape: f32[8,10], index: 4, kind: output, shape index: {}]  }
   0x1   :  { %v19_v0 = vld [vmem:[%s1336_s0] sm:$0xff]  ;;  %1061 = vset.pattern.permute.xlu1 %v1099_v1  ;;  %1059 = vset.pattern.permute.xlu0 %v1100_v2 }
   0x2   :  { %81 = vperm.xlu1 %1061, %v19_v0   ;;  %73 = vperm.xlu0 %1059, %v19_v0  }
   0x3   :  { %9 = vsyncpa [#allocation3], 0  ;;  %v1101_v3 = vmov 3   ;;  %v1102_v4 = vmov 1   ;;  %v1103_v5 = vmov 4   ;;  %v1104_v6 = vmov 5  }
   0x4   :  { %v1105_v7 = vmov 6   ;;  %v1106_v8 = vmov 7   ;;  %v1107_v9 = vmov 8   ;;  %v1108_v10 = vmov 9   ;;  %v20_v16 = vld [vmem:[%s1337_s1] sm:$0xff]  ;;  %v22_v18 = vld [vmem:[%s1338_s2 + $0x8] sm:$0xff] }
   0x5   :  { %v1109_v11 = vmov 10   ;;  %v1110_v12 = vmov 11   ;;  %v1111_v13 = vmov 12   ;;  %v1112_v14 = vmov 13   ;;  %v21_v17 = vld [vmem:[%s1338_s2] sm:$0xff]  ;;  %v23_v19 = vld [vmem:[%s1338_s2 + $0x10] sm:$0xff] }
   0x6   :  { %1062 = vset.pattern.permute.xlu1 %v1101_v3  ;;  %1060 = vset.pattern.permute.xlu0 %v1102_v4  ;;  %v1113_v15 = vmov 15   ;;  %v24_v20 = vld [vmem:[%s1338_s2 + $0x18] sm:$0xff]  ;;  %v1114_v21 = vmov 14   ;;  %v25_v22 = vld [vmem:[%s1339_s3] sm:$0xff]  ;;  %v26_v23 = vld [vmem:[%s1339_s3 + $0x8] sm:$0x3]  ;;  %v59_v27 = vlaneseq }
   0x7   :  { %85 = vperm.xlu1 %1062, %v19_v0   ;;  %77 = vperm.xlu0 %1060, %v19_v0   ;;  %vm363_vm2 = vcmask 64512   ;;  %v1115_v61 = vmov 0.0   ;;  %vm388_vm3 = vcmask 1043456   ;;  %s1116_s2 = smov [#allocation2]  }
   0x8   :  { %v60_v30 = vshrl.u32 %v59_v27, 7  ;;  %s866_s3 = sshll.u32 %s1116_s2, 4  ;;  %s867_s3 = int_to_ptr.vmem [resolvable:$true] %s866_s3 }
   0x9   :  { %s1075_s29 = scalar_lea.vmem %s867_s3, 128  ;;  %p1080_p1 = scmp.lt.s32.totalorder %s867_s3, %s867_s3 }
   0xa   :  { %v61_v33 = vsub.s32 0, %v60_v30  ;;  %v65_v34 = vsub.s32 1, %v60_v30  ;;  %v69_v35 = vsub.s32 2, %v60_v30  ;;  %p1076_p0 = scmp.ne.s32.totalorder %s867_s3, %s1075_s29  ;;  %p1081_p2 = scmp.lt.s32.totalorder %s1075_s29, %s1075_s29 }
   0xb   :  { %1063 = vset.pattern.permute.xlu1 %v1103_v5  ;;  %1064 = vset.pattern.permute.xlu0 %v1104_v6 }
   0xc   :  { %89 = vperm.xlu1 %1063, %v19_v0   ;;  %93 = vperm.xlu0 %1064, %v19_v0   ;;  %p1082_p3 = por %p1081_p2, %p1080_p1 }
   0xe   :  { %p1083_p4 = pnand %p1082_p3, %p1076_p0 }
  0x10   :  { %1065 = vset.pattern.permute.xlu1 %v1105_v7  ;;  %1066 = vset.pattern.permute.xlu0 %v1106_v8 }
  0x11   :  { %97 = vperm.xlu1 %1065, %v19_v0   ;;  %101 = vperm.xlu0 %1066, %v19_v0  }
  0x15   :  { %1067 = vset.pattern.permute.xlu0 %v1107_v9 }
  0x16   :  { %105 = vperm.xlu0 %1067, %v19_v0  }
  0x1a   :  { %1068 = vset.pattern.permute.xlu0 %v1108_v10 }
  0x1b   :  { %109 = vperm.xlu0 %1068, %v19_v0  }
  0x1f   :  { %1069 = vset.pattern.permute.xlu0 %v1109_v11 }
  0x20   :  { %113 = vperm.xlu0 %1069, %v19_v0  }
  0x24   :  { %1070 = vset.pattern.permute.xlu0 %v1110_v12 }
  0x25   :  { %117 = vperm.xlu0 %1070, %v19_v0  }
  0x29   :  { %1071 = vset.pattern.permute.xlu0 %v1111_v13 }
  0x2a   :  { %121 = vperm.xlu0 %1071, %v19_v0  }
  0x2e   :  { %1072 = vset.pattern.permute.xlu0 %v1112_v14 }
  0x2f   :  { %125 = vperm.xlu0 %1072, %v19_v0  }
  0x33   :  { %1074 = vset.pattern.permute.xlu0 %v1113_v15 }
  0x34   :  { %133 = vperm.xlu0 %1074, %v19_v0  }
  0x3a   :  { %27 = vxpose.xlu1.b32.start.end [1/1] (short) (narrow) %v20_v16, 8 }
  0x3e   :  { %330 = vxpose.xlu1.b32.start [1/4] (short) (narrow) %v21_v17, 8 }
  0x42   :  { %331 = vxpose.xlu1.b32.cont [2/4] (short) (narrow) %v22_v18, 8 }
  0x46   :  { %332 = vxpose.xlu1.b32.cont [3/4] (short) (narrow) %v23_v19, 8 }
  0x4a   :  { %333 = vxpose.xlu1.b32.end [4/4] (short) (narrow) %v24_v20, 8 }
  0x52   :  { %591 = vxpose.xlu0.b32.start [1/2] (short) (narrow) %v25_v22, 32 }
  0x56   :  { %592 = vxpose.xlu0.b32.end [2/2] (short) (narrow) %v26_v23, 32 }
  0x68   :  { %1073 = vset.pattern.permute.xlu1 %v1114_v21 }
  0x69   :  { %129 = vperm.xlu1 %1073, %v19_v0  }
  0x81   :  { %v82_v24 = vpop.permute.xlu1 %81  ;;  %v74_v26 = vpop.permute.xlu0 %73 }
  0x86   :  { %v86_v25 = vpop.permute.xlu1 %85  ;;  %v78_v29 = vpop.permute.xlu0 %77 }
  0x8b   :  { %v90_v28 = vpop.permute.xlu1 %89  ;;  %v1168_v32 = vpop.permute.xlu0 %93 }
  0x90   :  { %v1166_v31 = vpop.permute.xlu1 %97  ;;  %v1176_v40 = vpop.permute.xlu0 %101 }
  0x95   :  { %v1185_v52 = vpop.permute.xlu0 %105 }
  0x9a   :  { %v1192_v5 = vpop.permute.xlu0 %109 }
  0x9f   :  { %v1201_v18 = vpop.permute.xlu0 %113 }
  0xba   :  { %v43_v36 = vpop.trf.xlu1 }
  0xbb   :  { %v1170_v37 = vrot.slane %v43_v36, %v61_v33  ;;  %v1172_v38 = vrot.slane %v43_v36, %v65_v34  ;;  %v1174_v39 = vrot.slane %v43_v36, %v69_v35  ;;  %v1214_v33 = vpop.permute.xlu0 %117 }
  0xbd   :  { %v136_v41 = vmul.f32 %v74_v26, %v1172_v38  ;;  %v138_v42 = vmul.f32 %v78_v29, %v1174_v39  ;;  %v146_v43 = vmul.f32 %v74_v26, %v1170_v37  ;;  %v148_v44 = vmul.f32 %v78_v29, %v1172_v38 }
  0xbe   :  { %v158_v46 = vmul.f32 %v78_v29, %v1170_v37  ;;  %v160_v47 = vmul.f32 %v82_v24, %v1172_v38  ;;  %v150_v49 = vmul.f32 %v82_v24, %v1174_v39  ;;  %v170_v56 = vmul.f32 %v82_v24, %v1170_v37  ;;  %v346_v59 = vpop.trf.xlu1 }
  0xbf   :  { %v139_v45 = vadd.f32 %v138_v42, %v136_v41  ;;  %v149_v48 = vadd.f32 %v148_v44, %v146_v43  ;;  %v172_v57 = vmul.f32 %v86_v25, %v1172_v38  ;;  %v162_v58 = vmul.f32 %v86_v25, %v1174_v39 }
  0xc0   :  { %v161_v54 = vadd.f32 %v160_v47, %v158_v46  ;;  %v362_v4 = vpack.c.bf16 %v346_v59, %v346_v59  ;;  %v182_v7 = vmul.f32 %v86_v25, %v1170_v37  ;;  %v184_v8 = vmul.f32 %v90_v28, %v1172_v38  ;;  %v1222_v46 = vpop.permute.xlu0 %121 }
  0xc1   :  { %vm141_vm0 = vcmp.ge.f32.partialorder %v139_v45, 1.0  ;;  %v875_v50 = vadd.f32 -1.0, %v139_v45  ;;  %v151_v51 = vadd.f32 %v150_v49, %v149_v48  ;;  %v173_v2 = vadd.f32 %v172_v57, %v170_v56 }
  0xc2   :  { %v874_v62 = vsel %vm141_vm0, 1.0, %v1115_v61  ;;  %v163_v0 = vadd.f32 %v162_v58, %v161_v54  ;;  %v174_v9 = vmul.f32 %v90_v28, %v1174_v39  ;;  %1040 = vmatprep.subr.msk.bf16.mxu0 %vm388_vm3, %v362_v4  ;;  %v390_v10 = vsel %vm388_vm3, %v362_v4, 0 }
  0xc3   :  { %v145_v53 = vsel %vm141_vm0, %v875_v50, %v139_v45  ;;  %1003 = vmatpush3.bf16.msra.mxu0 %v390_v10  ;;  %v185_v14 = vadd.f32 %v184_v8, %v182_v7  ;;  %v194_v16 = vmul.f32 %v90_v28, %v1170_v37  ;;  %v196_v17 = vmul.f32 %v1168_v32, %v1172_v38 }
  0xc4   :  { %v152_v55 = vadd.f32 %v151_v51, %v145_v53  ;;  %v175_v12 = vadd.f32 %v174_v9, %v173_v2  ;;  %v186_v19 = vmul.f32 %v1168_v32, %v1174_v39  ;;  %v206_v28 = vmul.f32 %v1168_v32, %v1170_v37  ;;  %v126_v59 = vpop.permute.xlu0 %125 }
  0xc5   :  { %v197_v25 = vadd.f32 %v196_v17, %v194_v16  ;;  %v208_v29 = vmul.f32 %v1166_v31, %v1172_v38  ;;  %v198_v30 = vmul.f32 %v1166_v31, %v1174_v39  ;;  %v218_v43 = vmul.f32 %v1166_v31, %v1170_v37 }
  0xc6   :  { %vm153_vm1 = vcmp.ge.f32.partialorder %v152_v55, 1.0  ;;  %v877_v60 = vadd.f32 -1.0, %v152_v55  ;;  %v187_v21 = vadd.f32 %v186_v19, %v185_v14  ;;  %v220_v32 = vmul.f32 %v1176_v40, %v1172_v38 }
  0xc7   :  { %v876_v63 = vsel %vm153_vm1, 1.0, %v1115_v61  ;;  %v199_v35 = vadd.f32 %v198_v30, %v197_v25  ;;  %v209_v41 = vadd.f32 %v208_v29, %v206_v28  ;;  %v210_v44 = vmul.f32 %v1176_v40, %v1174_v39 }
  0xc8   :  { %v157_v1 = vsel %vm153_vm1, %v877_v60, %v152_v55  ;;  %v322_v3 = vpack.c.bf16 %v876_v63, %v874_v62  ;;  %v221_v51 = vadd.f32 %v220_v32, %v218_v43  ;;  %v230_v31 = vmul.f32 %v1176_v40, %v1170_v37  ;;  %v134_v10 = vpop.permute.xlu0 %133 }
  0xc9   :  { %v164_v6 = vadd.f32 %v163_v0, %v157_v1  ;;  %v211_v47 = vadd.f32 %v210_v44, %v209_v41  ;;  %v232_v55 = vmul.f32 %v1185_v52, %v1172_v38  ;;  %v222_v56 = vmul.f32 %v1185_v52, %v1174_v39 }
  0xca   :  { %1004 = vmatprep.mubr.msk.bf16.mxu0 %vm363_vm2, %v322_v3  ;;  %v242_v0 = vmul.f32 %v1185_v52, %v1170_v37  ;;  %v244_v40 = vmul.f32 %v1192_v5, %v1172_v38  ;;  %v234_v1 = vmul.f32 %v1192_v5, %v1174_v39  ;;  %v254_v52 = vmul.f32 %v1192_v5, %v1170_v37 }
  0xcb   :  { %vm165_vm4 = vcmp.ge.f32.partialorder %v164_v6, 1.0  ;;  %v879_v11 = vadd.f32 -1.0, %v164_v6  ;;  %v223_v58 = vadd.f32 %v222_v56, %v221_v51  ;;  %v233_v62 = vadd.f32 %v232_v55, %v230_v31 }
  0xcc   :  { %v878_v22 = vsel %vm165_vm4, 1.0, %v1115_v61  ;;  %v245_v8 = vadd.f32 %v244_v40, %v242_v0  ;;  %v246_v14 = vmul.f32 %v1201_v18, %v1174_v39  ;;  %v302_v16 = vmul.f32 %v126_v59, %v1170_v37 }
  0xcd   :  { %v169_v13 = vsel %vm165_vm4, %v879_v11, %v164_v6  ;;  %v235_v3 = vadd.f32 %v234_v1, %v233_v62  ;;  %v316_v19 = vmul.f32 %v134_v10, %v1172_v38  ;;  %v258_v29 = vmul.f32 %v1214_v33, %v1174_v39 }
  0xce   :  { %v176_v15 = vadd.f32 %v175_v12, %v169_v13  ;;  %v256_v12 = vmul.f32 %v1201_v18, %v1172_v38  ;;  %v278_v44 = vmul.f32 %v1214_v33, %v1170_v37  ;;  %v292_v55 = vmul.f32 %v126_v59, %v1172_v38 }
  0xcf   :  { %vm625_vm4 = vcmask 261120  }
  0xd0   :  { %vm177_vm5 = vcmp.ge.f32.partialorder %v176_v15, 1.0  ;;  %v881_v20 = vadd.f32 -1.0, %v176_v15 }
  0xd1   :  { %v880_v23 = vsel %vm177_vm5, 1.0, %v1115_v61 }
  0xd2   :  { %v181_v24 = vsel %vm177_vm5, %v881_v20, %v176_v15  ;;  %v323_v26 = vpack.c.bf16 %v880_v23, %v878_v22  ;;  %v247_v20 = vadd.f32 %v246_v14, %v245_v8  ;;  %v257_v23 = vadd.f32 %v256_v12, %v254_v52  ;;  %v607_v12 = vpop.trf.xlu0 }
  0xd3   :  { %v188_v27 = vadd.f32 %v187_v21, %v181_v24  ;;  %v306_v21 = vmul.f32 %v134_v10, %v1174_v39 }
  0xd4   :  { %1005 = vmatmul.mubr.msk.bf16.vlgmr.msra.gmra.mrb[0].mxu0 %vm363_vm2, %v323_v26  ;;  %v266_v26 = vmul.f32 %v1201_v18, %v1170_v37 }
  0xd5   :  { %vm189_vm6 = vcmp.ge.f32.partialorder %v188_v27, 1.0  ;;  %v883_v34 = vadd.f32 -1.0, %v188_v27 }
  0xd6   :  { %v882_v48 = vsel %vm189_vm6, 1.0, %v1115_v61 }
  0xd7   :  { %v193_v36 = vsel %vm189_vm6, %v883_v34, %v188_v27  ;;  %v268_v27 = vmul.f32 %v1214_v33, %v1172_v38  ;;  %v290_v33 = vmul.f32 %v1222_v46, %v1170_v37 }
  0xd8   :  { %v200_v42 = vadd.f32 %v199_v35, %v193_v36  ;;  %v259_v35 = vadd.f32 %v258_v29, %v257_v23 }
  0xd9   :  { %v269_v43 = vadd.f32 %v268_v27, %v266_v26  ;;  %v293_v40 = vadd.f32 %v292_v55, %v290_v33 }
  0xda   :  { %vm201_vm7 = vcmp.ge.f32.partialorder %v200_v42, 1.0  ;;  %v885_v45 = vadd.f32 -1.0, %v200_v42 }
  0xdb   :  { %v884_v49 = vsel %vm201_vm7, 1.0, %v1115_v61 }
  0xdc   :  { %v205_v50 = vsel %vm201_vm7, %v885_v45, %v200_v42  ;;  %v324_v53 = vpack.c.bf16 %v884_v49, %v882_v48  ;;  %v280_v45 = vmul.f32 %v1222_v46, %v1172_v38 }
  0xdd   :  { %v212_v54 = vadd.f32 %v211_v47, %v205_v50  ;;  %v270_v47 = vmul.f32 %v1222_v46, %v1174_v39 }
  0xde   :  { %1008 = vmatprep.mubr.msk.bf16.mxu0 %vm363_vm2, %v324_v53  ;;  %v281_v51 = vadd.f32 %v280_v45, %v278_v44 }
  0xdf   :  { %vm213_vm8 = vcmp.ge.f32.partialorder %v212_v54, 1.0  ;;  %v887_v57 = vadd.f32 -1.0, %v212_v54  ;;  %v271_v49 = vadd.f32 %v270_v47, %v269_v43 }
  0xe0   :  { %v886_v4 = vsel %vm213_vm8, 1.0, %v1115_v61 }
  0xe1   :  { %v217_v60 = vsel %vm213_vm8, %v887_v57, %v212_v54  ;;  %v282_v54 = vmul.f32 %v126_v59, %v1174_v39 }
  0xe2   :  { %v224_v63 = vadd.f32 %v223_v58, %v217_v60 }
  0xe3   :  { %v283_v56 = vadd.f32 %v282_v54, %v281_v51 }
  0xe4   :  { %vm225_vm9 = vcmp.ge.f32.partialorder %v224_v63, 1.0  ;;  %v889_v2 = vadd.f32 -1.0, %v224_v63 }
  0xe5   :  { %v888_v6 = vsel %vm225_vm9, 1.0, %v1115_v61 }
  0xe6   :  { %v229_v7 = vsel %vm225_vm9, %v889_v2, %v224_v63  ;;  %v325_v9 = vpack.c.bf16 %v888_v6, %v886_v4 }
  0xe7   :  { %v236_v11 = vadd.f32 %v235_v3, %v229_v7 }
  0xe8   :  { %v130_v13 = vpop.permute.xlu1 %129  ;;  %1009 = vmatmul.mubr.msk.bf16.gmra.mrb[4].mxu0 %vm363_vm2, %v325_v9 }
  0xe9   :  { %vm237_vm10 = vcmp.ge.f32.partialorder %v236_v11, 1.0  ;;  %v891_v15 = vadd.f32 -1.0, %v236_v11  ;;  %v304_v17 = vmul.f32 %v130_v13, %v1172_v38  ;;  %v314_v5 = vmul.f32 %v130_v13, %v1170_v37 }
  0xea   :  { %v890_v36 = vsel %vm237_vm10, 1.0, %v1115_v61  ;;  %v294_v62 = vmul.f32 %v130_v13, %v1174_v39  ;;  %v608_v13 = vpop.trf.xlu0 }
  0xeb   :  { %v241_v22 = vsel %vm237_vm10, %v891_v15, %v236_v11  ;;  %v305_v24 = vadd.f32 %v304_v17, %v302_v16  ;;  %v317_v28 = vadd.f32 %v316_v19, %v314_v5  ;;  %v623_v14 = vpack.c.bf16 %v608_v13, %v607_v12 }
  0xec   :  { %v248_v25 = vadd.f32 %v247_v20, %v241_v22  ;;  %v295_v2 = vadd.f32 %v294_v62, %v293_v40 }
  0xed   :  { %v307_v30 = vadd.f32 %v306_v21, %v305_v24  ;;  %1020 = vmatprep.subr.bf16.mxu1 %v623_v14 }
  0xee   :  { %vm249_vm11 = vcmp.ge.f32.partialorder %v248_v25, 1.0  ;;  %v893_v34 = vadd.f32 -1.0, %v248_v25  ;;  %1021 = vmatpush3.bf16.msra.mxu1 %v623_v14  ;;  %v609_v15 = vpop.trf.xlu0 }
  0xef   :  { %v892_v41 = vsel %vm249_vm11, 1.0, %v1115_v61 }
  0xf0   :  { %v253_v42 = vsel %vm249_vm11, %v893_v34, %v248_v25  ;;  %v326_v32 = vpack.c.bf16 %v892_v41, %v890_v36 }
  0xf1   :  { %v260_v18 = vadd.f32 %v259_v35, %v253_v42 }
  0xf2   :  { %1012 = vmatprep.mubr.msk.bf16.mxu0 %vm363_vm2, %v326_v32  ;;  %v610_v16 = vpop.trf.xlu0 }
  0xf3   :  { %vm261_vm12 = vcmp.ge.f32.partialorder %v260_v18, 1.0  ;;  %v895_v48 = vadd.f32 -1.0, %v260_v18  ;;  %v624_v17 = vpack.c.bf16 %v610_v16, %v609_v15 }
  0xf4   :  { %v894_v57 = vsel %vm261_vm12, 1.0, %v1115_v61 }
  0xf5   :  { %v265_v50 = vsel %vm261_vm12, %v895_v48, %v260_v18  ;;  %1022 = vmatprep.subr.bf16.mxu1 %v624_v17 }
  0xf6   :  { %v272_v53 = vadd.f32 %v271_v49, %v265_v50  ;;  %1023 = vmatpush3.bf16.msra.mxu1 %v624_v17 }
  0xf8   :  { %vm273_vm13 = vcmp.ge.f32.partialorder %v272_v53, 1.0  ;;  %v897_v31 = vadd.f32 -1.0, %v272_v53 }
  0xf9   :  { %v896_v58 = vsel %vm273_vm13, 1.0, %v1115_v61 }
  0xfa   :  { %v277_v60 = vsel %vm273_vm13, %v897_v31, %v272_v53  ;;  %v327_v63 = vpack.c.bf16 %v896_v58, %v894_v57 }
  0xfb   :  { %v284_v0 = vadd.f32 %v283_v56, %v277_v60 }
  0xfc   :  { %1013 = vmatmul.mubr.msk.bf16.gmra.mrb[8].mxu0 %vm363_vm2, %v327_v63 }
  0xfd   :  { %vm285_vm14 = vcmp.ge.f32.partialorder %v284_v0, 1.0  ;;  %v899_v1 = vadd.f32 -1.0, %v284_v0 }
  0xfe   :  { %v898_v46 = vsel %vm285_vm14, 1.0, %v1115_v61 }
  0xff   :  { %v289_v3 = vsel %vm285_vm14, %v899_v1, %v284_v0 }
 0x100   :  { %v296_v37 = vadd.f32 %v295_v2, %v289_v3 }
 0x102   :  { %vm297_vm15 = vcmp.ge.f32.partialorder %v296_v37, 1.0  ;;  %v901_v38 = vadd.f32 -1.0, %v296_v37 }
 0x103   :  { %v900_v59 = vsel %vm297_vm15, 1.0, %v1115_v61 }
 0x104   :  { %v301_v4 = vsel %vm297_vm15, %v901_v38, %v296_v37  ;;  %v328_v6 = vpack.c.bf16 %v900_v59, %v898_v46 }
 0x105   :  { %v308_v7 = vadd.f32 %v307_v30, %v301_v4 }
 0x106   :  { %1016 = vmatprep.mubr.msk.bf16.mxu0 %vm363_vm2, %v328_v6 }
 0x107   :  { %vm309_vm0 = vcmp.ge.f32.partialorder %v308_v7, 1.0  ;;  %v903_v39 = vadd.f32 -1.0, %v308_v7 }
 0x108   :  { %v902_v11 = vsel %vm309_vm0, 1.0, %v1115_v61 }
 0x109   :  { %v313_v8 = vsel %vm309_vm0, %v903_v39, %v308_v7 }
 0x10a   :  { %v318_v9 = vadd.f32 %v317_v28, %v313_v8 }
 0x10c   :  { %vm319_vm1 = vcmp.ge.f32.partialorder %v318_v9, 1.0 }
 0x10d   :  { %v904_v10 = vsel %vm319_vm1, 1.0, %v1115_v61 }
 0x10e   :  { %v329_v52 = vpack.c.bf16 %v904_v10, %v902_v11 }
 0x110   :  { %1017 = vmatmul.mubr.msk.bf16.gmra.mrb[12].mxu0 %vm363_vm2, %v329_v52 }
 0x1a7   :  { %v1006_v19 = vpop.f32.mrb[0].mxu0 }
 0x1a8   :  { %v426_v20 = vpop.f32.mrb[1].mxu0 }
 0x1a9   :  { %vm490_vm3 = vcmp.ge.f32.partialorder %v426_v20, 1.0  ;;  %v914_v5 = vadd.f32 -1.0, %v426_v20  ;;  %v1007_v21 = vpop.f32.mrb[2].mxu0 }
 0x1aa   :  { %v429_v22 = vpop.f32.mrb[3].mxu0  ;;  %v913_v26 = vsel %vm490_vm3, 1.0, %v1115_v61 }
 0x1ab   :  { %v494_v23 = vsel %vm490_vm3, %v914_v5, %v426_v20 }
 0x1ac   :  { %v495_v24 = vadd.f32 %v494_v23, %v429_v22 }
 0x1ae   :  { %v916_v25 = vadd.f32 -1.0, %v495_v24  ;;  %vm496_vm2 = vcmp.ge.f32.partialorder %v495_v24, 1.0 }
 0x1af   :  { %v915_v27 = vsel %vm496_vm2, 1.0, %v1115_v61 }
 0x1b0   :  { %v500_v28 = vsel %vm496_vm2, %v916_v25, %v495_v24  ;;  %v583_v29 = vpack.c.bf16 %v915_v27, %v913_v26 }
 0x1b1   :  { %v501_v30 = vadd.f32 %v1006_v19, %v500_v28 }
 0x1b2   :  { %1024 = vmatprep.mubr.msk.bf16.mxu1 %vm625_vm4, %v583_v29 }
 0x1b3   :  { %v918_v34 = vadd.f32 -1.0, %v501_v30  ;;  %vm502_vm5 = vcmp.ge.f32.partialorder %v501_v30, 1.0 }
 0x1b4   :  { %v917_v42 = vsel %vm502_vm5, 1.0, %v1115_v61 }
 0x1b5   :  { %v506_v35 = vsel %vm502_vm5, %v918_v34, %v501_v30 }
 0x1b6   :  { %v507_v36 = vadd.f32 %v1007_v21, %v506_v35 }
 0x1b8   :  { %vm508_vm6 = vcmp.ge.f32.partialorder %v507_v36, 1.0  ;;  %v920_v41 = vadd.f32 -1.0, %v507_v36 }
 0x1b9   :  { %v919_v43 = vsel %vm508_vm6, 1.0, %v1115_v61 }
 0x1ba   :  { %v584_v32 = vpack.c.bf16 %v919_v43, %v917_v42  ;;  %v512_v45 = vsel %vm508_vm6, %v920_v41, %v507_v36 }
 0x1bb   :  { %v1010_v18 = vpop.f32.mrb[4].mxu0 }
 0x1bc   :  { %v442_v44 = vpop.f32.mrb[5].mxu0  ;;  %1025 = vmatmul.mubr.msk.bf16.vlgmr.msra.gmra.mrb[0].mxu1 %vm625_vm4, %v584_v32 }
 0x1bd   :  { %v513_v47 = vadd.f32 %v512_v45, %v442_v44  ;;  %v1011_v48 = vpop.f32.mrb[6].mxu0 }
 0x1be   :  { %v445_v49 = vpop.f32.mrb[7].mxu0 }
 0x1bf   :  { %v922_v50 = vadd.f32 -1.0, %v513_v47  ;;  %vm514_vm7 = vcmp.ge.f32.partialorder %v513_v47, 1.0 }
 0x1c0   :  { %v921_v31 = vsel %vm514_vm7, 1.0, %v1115_v61 }
 0x1c1   :  { %v518_v51 = vsel %vm514_vm7, %v922_v50, %v513_v47 }
 0x1c2   :  { %v519_v53 = vadd.f32 %v518_v51, %v445_v49 }
 0x1c4   :  { %vm520_vm8 = vcmp.ge.f32.partialorder %v519_v53, 1.0  ;;  %v924_v54 = vadd.f32 -1.0, %v519_v53 }
 0x1c5   :  { %v923_v33 = vsel %vm520_vm8, 1.0, %v1115_v61 }
 0x1c6   :  { %v524_v55 = vsel %vm520_vm8, %v924_v54, %v519_v53  ;;  %v585_v56 = vpack.c.bf16 %v923_v33, %v921_v31 }
 0x1c7   :  { %v525_v57 = vadd.f32 %v1010_v18, %v524_v55 }
 0x1c8   :  { %1028 = vmatprep.mubr.msk.bf16.mxu1 %vm625_vm4, %v585_v56 }
 0x1c9   :  { %v926_v58 = vadd.f32 -1.0, %v525_v57  ;;  %vm526_vm9 = vcmp.ge.f32.partialorder %v525_v57, 1.0 }
 0x1ca   :  { %v925_v40 = vsel %vm526_vm9, 1.0, %v1115_v61 }
 0x1cb   :  { %v530_v60 = vsel %vm526_vm9, %v926_v58, %v525_v57 }
 0x1cc   :  { %v531_v62 = vadd.f32 %v1011_v48, %v530_v60 }
 0x1ce   :  { %vm532_vm10 = vcmp.ge.f32.partialorder %v531_v62, 1.0  ;;  %v928_v63 = vadd.f32 -1.0, %v531_v62 }
 0x1cf   :  { %v1014_v0 = vpop.f32.mrb[8].mxu0  ;;  %v927_v1 = vsel %vm532_vm10, 1.0, %v1115_v61 }
 0x1d0   :  { %v458_v2 = vpop.f32.mrb[9].mxu0  ;;  %v536_v3 = vsel %vm532_vm10, %v928_v63, %v531_v62  ;;  %v586_v37 = vpack.c.bf16 %v927_v1, %v925_v40 }
 0x1d1   :  { %v537_v38 = vadd.f32 %v536_v3, %v458_v2  ;;  %v1015_v46 = vpop.f32.mrb[10].mxu0 }
 0x1d2   :  { %v461_v59 = vpop.f32.mrb[11].mxu0  ;;  %1029 = vmatmul.mubr.msk.bf16.gmra.mrb[4].mxu1 %vm625_vm4, %v586_v37 }
 0x1d3   :  { %v930_v4 = vadd.f32 -1.0, %v537_v38  ;;  %vm538_vm11 = vcmp.ge.f32.partialorder %v537_v38, 1.0 }
 0x1d4   :  { %v929_v8 = vsel %vm538_vm11, 1.0, %v1115_v61 }
 0x1d5   :  { %v542_v6 = vsel %vm538_vm11, %v930_v4, %v537_v38 }
 0x1d6   :  { %v543_v7 = vadd.f32 %v542_v6, %v461_v59 }
 0x1d8   :  { %vm544_vm12 = vcmp.ge.f32.partialorder %v543_v7, 1.0  ;;  %v932_v39 = vadd.f32 -1.0, %v543_v7 }
 0x1d9   :  { %v931_v9 = vsel %vm544_vm12, 1.0, %v1115_v61 }
 0x1da   :  { %v548_v10 = vsel %vm544_vm12, %v932_v39, %v543_v7  ;;  %v587_v11 = vpack.c.bf16 %v931_v9, %v929_v8 }
 0x1db   :  { %v549_v52 = vadd.f32 %v1014_v0, %v548_v10 }
 0x1dc   :  { %1032 = vmatprep.mubr.msk.bf16.mxu1 %vm625_vm4, %v587_v11 }
 0x1dd   :  { %v934_v12 = vadd.f32 -1.0, %v549_v52  ;;  %vm550_vm13 = vcmp.ge.f32.partialorder %v549_v52, 1.0 }
 0x1de   :  { %v933_v17 = vsel %vm550_vm13, 1.0, %v1115_v61 }
 0x1df   :  { %v554_v13 = vsel %vm550_vm13, %v934_v12, %v549_v52 }
 0x1e0   :  { %v555_v14 = vadd.f32 %v1015_v46, %v554_v13 }
 0x1e2   :  { %vm556_vm14 = vcmp.ge.f32.partialorder %v555_v14, 1.0  ;;  %v936_v15 = vadd.f32 -1.0, %v555_v14 }
 0x1e3   :  { %v1018_v16 = vpop.f32.mrb[12].mxu0  ;;  %v935_v19 = vsel %vm556_vm14, 1.0, %v1115_v61 }
 0x1e4   :  { %v474_v20 = vpop.f32.mrb[13].mxu0  ;;  %v560_v5 = vsel %vm556_vm14, %v936_v15, %v555_v14  ;;  %v588_v21 = vpack.c.bf16 %v935_v19, %v933_v17 }
 0x1e5   :  { %v561_v22 = vadd.f32 %v560_v5, %v474_v20  ;;  %v1019_v23 = vpop.f32.mrb[14].mxu0 }
 0x1e6   :  { %v477_v24 = vpop.f32.mrb[15].mxu0  ;;  %1033 = vmatmul.mubr.msk.bf16.gmra.mrb[8].mxu1 %vm625_vm4, %v588_v21 }
 0x1e7   :  { %v938_v25 = vadd.f32 -1.0, %v561_v22  ;;  %vm562_vm15 = vcmp.ge.f32.partialorder %v561_v22, 1.0 }
 0x1e8   :  { %v937_v29 = vsel %vm562_vm15, 1.0, %v1115_v61 }
 0x1e9   :  { %v566_v26 = vsel %vm562_vm15, %v938_v25, %v561_v22 }
 0x1ea   :  { %v567_v27 = vadd.f32 %v566_v26, %v477_v24 }
 0x1ec   :  { %vm568_vm0 = vcmp.ge.f32.partialorder %v567_v27, 1.0  ;;  %v940_v28 = vadd.f32 -1.0, %v567_v27 }
 0x1ed   :  { %v939_v30 = vsel %vm568_vm0, 1.0, %v1115_v61 }
 0x1ee   :  { %v572_v34 = vsel %vm568_vm0, %v940_v28, %v567_v27  ;;  %v589_v35 = vpack.c.bf16 %v939_v30, %v937_v29 }
 0x1ef   :  { %v573_v36 = vadd.f32 %v1018_v16, %v572_v34 }
 0x1f0   :  { %1036 = vmatprep.mubr.msk.bf16.mxu1 %vm625_vm4, %v589_v35 }
 0x1f1   :  { %v942_v41 = vadd.f32 -1.0, %v573_v36  ;;  %vm574_vm1 = vcmp.ge.f32.partialorder %v573_v36, 1.0 }
 0x1f2   :  { %v941_v32 = vsel %vm574_vm1, 1.0, %v1115_v61 }
 0x1f3   :  { %v578_v42 = vsel %vm574_vm1, %v942_v41, %v573_v36 }
 0x1f4   :  { %v579_v43 = vadd.f32 %v1019_v23, %v578_v42 }
 0x1f6   :  { %vm580_vm3 = vcmp.ge.f32.partialorder %v579_v43, 1.0 }
 0x1f7   :  { %v943_v18 = vsel %vm580_vm3, 1.0, %v1115_v61 }
 0x1f8   :  { %v590_v44 = vpack.c.bf16 %v943_v18, %v941_v32 }
 0x1fa   :  { %1037 = vmatmul.mubr.msk.bf16.gmra.mrb[12].mxu1 %vm625_vm4, %v590_v44 }
 0x28f   :  { %v1026_v45 = vpop.f32.mrb[0].mxu1 }
 0x290   :  { %v684_v47 = vpop.f32.mrb[1].mxu1 }
 0x291   :  { %vm748_vm2 = vcmp.ge.f32.partialorder %v684_v47, 1.0  ;;  %v953_v48 = vadd.f32 -1.0, %v684_v47  ;;  %v1027_v49 = vpop.f32.mrb[2].mxu1 }
 0x292   :  { %v687_v50 = vpop.f32.mrb[3].mxu1  ;;  %v952_v31 = vsel %vm748_vm2, 1.0, %v1115_v61 }
 0x293   :  { %v752_v51 = vsel %vm748_vm2, %v953_v48, %v684_v47  ;;  %vm858_vm2 = vcmask 80896  }
 0x294   :  { %v754_v53 = vadd.f32 %v752_v51, %v687_v50 }
 0x296   :  { %vm755_vm5 = vcmp.ge.f32.partialorder %v754_v53, 1.0  ;;  %v955_v54 = vadd.f32 -1.0, %v754_v53 }
 0x297   :  { %v954_v33 = vsel %vm755_vm5, 1.0, %v1115_v61 }
 0x298   :  { %v759_v55 = vsel %vm755_vm5, %v955_v54, %v754_v53  ;;  %v760_v56 = vadd.f32 %v954_v33, %v952_v31 }
 0x299   :  { %v761_v57 = vadd.f32 %v1026_v45, %v759_v55 }
 0x29b   :  { %v957_v58 = vadd.f32 -1.0, %v761_v57  ;;  %vm762_vm6 = vcmp.ge.f32.partialorder %v761_v57, 1.0 }
 0x29c   :  { %v956_v60 = vsel %vm762_vm6, 1.0, %v1115_v61 }
 0x29d   :  { %v766_v62 = vsel %vm762_vm6, %v957_v58, %v761_v57  ;;  %v767_v63 = vadd.f32 %v956_v60, %v760_v56 }
 0x29e   :  { %v768_v0 = vadd.f32 %v1027_v49, %v766_v62 }
 0x2a0   :  { %vm769_vm4 = vcmp.ge.f32.partialorder %v768_v0, 1.0  ;;  %v959_v1 = vadd.f32 -1.0, %v768_v0 }
 0x2a1   :  { %v958_v40 = vsel %vm769_vm4, 1.0, %v1115_v61 }
 0x2a2   :  { %v774_v2 = vadd.f32 %v958_v40, %v767_v63  ;;  %v773_v38 = vsel %vm769_vm4, %v959_v1, %v768_v0 }
 0x2a5   :  { %v1030_v3 = vpop.f32.mrb[4].mxu1 }
 0x2a6   :  { %v700_v37 = vpop.f32.mrb[5].mxu1 }
 0x2a7   :  { %v775_v46 = vadd.f32 %v773_v38, %v700_v37  ;;  %v1031_v59 = vpop.f32.mrb[6].mxu1 }
 0x2a8   :  { %v703_v4 = vpop.f32.mrb[7].mxu1 }
 0x2a9   :  { %v961_v6 = vadd.f32 -1.0, %v775_v46  ;;  %vm776_vm7 = vcmp.ge.f32.partialorder %v775_v46, 1.0 }
 0x2aa   :  { %v960_v7 = vsel %vm776_vm7, 1.0, %v1115_v61 }
 0x2ab   :  { %v780_v39 = vsel %vm776_vm7, %v961_v6, %v775_v46  ;;  %v781_v8 = vadd.f32 %v960_v7, %v774_v2 }
 0x2ac   :  { %v782_v9 = vadd.f32 %v780_v39, %v703_v4 }
 0x2ae   :  { %vm783_vm8 = vcmp.ge.f32.partialorder %v782_v9, 1.0  ;;  %v963_v10 = vadd.f32 -1.0, %v782_v9 }
 0x2af   :  { %v962_v11 = vsel %vm783_vm8, 1.0, %v1115_v61 }
 0x2b0   :  { %v787_v52 = vsel %vm783_vm8, %v963_v10, %v782_v9  ;;  %v788_v12 = vadd.f32 %v962_v11, %v781_v8 }
 0x2b1   :  { %v789_v13 = vadd.f32 %v1030_v3, %v787_v52 }
 0x2b3   :  { %v965_v14 = vadd.f32 -1.0, %v789_v13  ;;  %vm790_vm9 = vcmp.ge.f32.partialorder %v789_v13, 1.0 }
 0x2b4   :  { %v964_v15 = vsel %vm790_vm9, 1.0, %v1115_v61 }
 0x2b5   :  { %v794_v16 = vsel %vm790_vm9, %v965_v14, %v789_v13  ;;  %v795_v17 = vadd.f32 %v964_v15, %v788_v12 }
 0x2b6   :  { %v796_v19 = vadd.f32 %v1031_v59, %v794_v16 }
 0x2b8   :  { %vm797_vm10 = vcmp.ge.f32.partialorder %v796_v19, 1.0  ;;  %v967_v20 = vadd.f32 -1.0, %v796_v19 }
 0x2b9   :  { %v1034_v5 = vpop.f32.mrb[8].mxu1  ;;  %v966_v21 = vsel %vm797_vm10, 1.0, %v1115_v61 }
 0x2ba   :  { %v716_v22 = vpop.f32.mrb[9].mxu1  ;;  %v801_v23 = vsel %vm797_vm10, %v967_v20, %v796_v19  ;;  %v802_v24 = vadd.f32 %v966_v21, %v795_v17 }
 0x2bb   :  { %v803_v25 = vadd.f32 %v801_v23, %v716_v22  ;;  %v1035_v26 = vpop.f32.mrb[10].mxu1 }
 0x2bc   :  { %v719_v27 = vpop.f32.mrb[11].mxu1 }
 0x2bd   :  { %v969_v28 = vadd.f32 -1.0, %v803_v25  ;;  %vm804_vm11 = vcmp.ge.f32.partialorder %v803_v25, 1.0 }
 0x2be   :  { %v968_v29 = vsel %vm804_vm11, 1.0, %v1115_v61 }
 0x2bf   :  { %v808_v30 = vsel %vm804_vm11, %v969_v28, %v803_v25  ;;  %v809_v34 = vadd.f32 %v968_v29, %v802_v24 }
 0x2c0   :  { %v810_v35 = vadd.f32 %v808_v30, %v719_v27 }
 0x2c2   :  { %vm811_vm12 = vcmp.ge.f32.partialorder %v810_v35, 1.0  ;;  %v971_v36 = vadd.f32 -1.0, %v810_v35 }
 0x2c3   :  { %v970_v41 = vsel %vm811_vm12, 1.0, %v1115_v61 }
 0x2c4   :  { %v815_v42 = vsel %vm811_vm12, %v971_v36, %v810_v35  ;;  %v816_v43 = vadd.f32 %v970_v41, %v809_v34 }
 0x2c5   :  { %v817_v32 = vadd.f32 %v1034_v5, %v815_v42 }
 0x2c7   :  { %v973_v18 = vadd.f32 -1.0, %v817_v32  ;;  %vm818_vm13 = vcmp.ge.f32.partialorder %v817_v32, 1.0 }
 0x2c8   :  { %v972_v44 = vsel %vm818_vm13, 1.0, %v1115_v61 }
 0x2c9   :  { %v822_v45 = vsel %vm818_vm13, %v973_v18, %v817_v32  ;;  %v823_v47 = vadd.f32 %v972_v44, %v816_v43 }
 0x2ca   :  { %v824_v48 = vadd.f32 %v1035_v26, %v822_v45 }
 0x2cc   :  { %vm825_vm14 = vcmp.ge.f32.partialorder %v824_v48, 1.0  ;;  %v975_v49 = vadd.f32 -1.0, %v824_v48 }
 0x2cd   :  { %v1038_v50 = vpop.f32.mrb[12].mxu1  ;;  %v974_v51 = vsel %vm825_vm14, 1.0, %v1115_v61 }
 0x2ce   :  { %v732_v53 = vpop.f32.mrb[13].mxu1  ;;  %v829_v54 = vsel %vm825_vm14, %v975_v49, %v824_v48  ;;  %v830_v31 = vadd.f32 %v974_v51, %v823_v47 }
 0x2cf   :  { %v831_v33 = vadd.f32 %v829_v54, %v732_v53  ;;  %v1039_v55 = vpop.f32.mrb[14].mxu1 }
 0x2d0   :  { %v735_v56 = vpop.f32.mrb[15].mxu1 }
 0x2d1   :  { %v977_v57 = vadd.f32 -1.0, %v831_v33  ;;  %vm832_vm15 = vcmp.ge.f32.partialorder %v831_v33, 1.0 }
 0x2d2   :  { %v976_v58 = vsel %vm832_vm15, 1.0, %v1115_v61 }
 0x2d3   :  { %v836_v60 = vsel %vm832_vm15, %v977_v57, %v831_v33  ;;  %v837_v62 = vadd.f32 %v976_v58, %v830_v31 }
 0x2d4   :  { %v838_v63 = vadd.f32 %v836_v60, %v735_v56 }
 0x2d6   :  { %vm839_vm0 = vcmp.ge.f32.partialorder %v838_v63, 1.0  ;;  %v979_v0 = vadd.f32 -1.0, %v838_v63 }
 0x2d7   :  { %v978_v40 = vsel %vm839_vm0, 1.0, %v1115_v61 }
 0x2d8   :  { %v843_v1 = vsel %vm839_vm0, %v979_v0, %v838_v63  ;;  %v844_v2 = vadd.f32 %v978_v40, %v837_v62 }
 0x2d9   :  { %v845_v3 = vadd.f32 %v1038_v50, %v843_v1 }
 0x2db   :  { %v981_v37 = vadd.f32 -1.0, %v845_v3  ;;  %vm846_vm1 = vcmp.ge.f32.partialorder %v845_v3, 1.0 }
 0x2dc   :  { %v980_v38 = vsel %vm846_vm1, 1.0, %v1115_v61 }
 0x2dd   :  { %v850_v46 = vsel %vm846_vm1, %v981_v37, %v845_v3  ;;  %v851_v59 = vadd.f32 %v980_v38, %v844_v2 }
 0x2de   :  { %v852_v4 = vadd.f32 %v1039_v55, %v850_v46 }
 0x2e0   :  { %vm853_vm3 = vcmp.ge.f32.partialorder %v852_v4, 1.0 }
 0x2e1   :  { %v982_v6 = vsel %vm853_vm3, 1.0, %v1115_v61 }
 0x2e2   :  { %v856_v7 = vadd.f32 %v982_v6, %v851_v59 }
 0x2e4   :  { %v857_v39 = vmul.f32 0.0625, %v856_v7 }
 0x2e6   :  { %859 = vst.msk [vmem:[#allocation2] sm:$0xff] %vm858_vm2, %v857_v39 }
 0x2e7   :  { %1086 = shalt.err (!%p1083_p4)
}
 0x2e8   :  { %s1087_s6 = scalar_lea.hbm %s1340_s4, 128 }
 0x2e9   :  { %p1088_p5 = scmp.ne.s32.totalorder %s1340_s4, %s1087_s6  ;;  %p1091_p6 = scmp.lt.u32.totalorder %s1087_s6, %s1340_s4 }
 0x2eb   :  { %p1093_p7 = pnand %p1091_p6, %p1088_p5 }
 0x2ed   :  { %1096 = shalt.err (!%p1093_p7)
}
 0x2ee   :  { %869 = dma.vmem_to_hbm [thread:$0]  %s867_s3, 128, %s1340_s4, [#allocation3]  }
 0x2ef   :  { %1097 = dma.done.wait [#allocation3], 128  }
 0x2f0   :  { %1098 = vsyncadd [#allocation3], 4294967168 }
 0x2f1   :  { %873 = vsyncpa [#allocation3], 1 }

</bundles_post_ra>
